<compile_context>
chip_gen: v5e
topology: v5e:2x2
jax: 0.10.0
libtpu: 0.0.40
codegen_flags: <defaults>
</compile_context>

<pallas_src>
import functools

import jax
import jax.numpy as jnp
from jax.experimental import pallas as pl
from jax.experimental.pallas import tpu as pltpu


def textcnn_kernel(ids_ref, tbl_hbm, shift_ref, wcat_ref, bcat_ref, mask_ref,
                   fcw_ref, fcb_ref, out_ref, emb_buf, dma_sems, *, num_classes):
    # ids_ref  : (B, L) int32 in SMEM (scalar prefetch)
    # tbl_hbm  : (V, E) f32 in HBM (memory_space=pl.ANY)
    # shift_ref: (kmax*L, L) f32   0/1 shift matrices stacked over taps
    # wcat_ref : (kmax, E, G*C) f32 fused conv weight (zero-padded taps)
    # bcat_ref : (1, G*C) f32      fused conv bias
    # mask_ref : (L, G*C) f32      0 on valid conv positions, -inf past L-k
    # fcw_ref  : (G*C, NC_pad) f32 fc weight, lane-padded to 128
    # fcb_ref  : (1, NC_pad) f32   fc bias, lane-padded
    # out_ref  : (1, 1, NC_pad) f32 log-probs for this batch row
    # emb_buf  : (L, E) f32 VMEM scratch for gathered embedding rows
    # dma_sems : (L,) DMA semaphores
    b = pl.program_id(0)
    L, _ = emb_buf.shape
    kmax = wcat_ref.shape[0]
    GC = wcat_ref.shape[2]

    # 1) Gather the L embedding rows for this batch straight from HBM.
    copies = []
    for l in range(L):
        row = ids_ref[b, l]
        cp = pltpu.make_async_copy(tbl_hbm.at[pl.ds(row, 1)],
                                   emb_buf.at[pl.ds(l, 1)],
                                   dma_sems.at[l])
        cp.start()
        copies.append(cp)
    for cp in copies:
        cp.wait()

    emb = emb_buf[...]                                               # (L, E)

    # 2) All tap shifts at once on the MXU: e_all[j*L + t] = emb[t + j] (0 past end).
    e_all = jnp.dot(shift_ref[...], emb, preferred_element_type=jnp.float32)

    # 3) Fused convolution: one (L, E) x (E, G*C) matmul per tap, aligned slices.
    acc = jnp.zeros((L, GC), jnp.float32)
    for j in range(kmax):
        acc = acc + jnp.dot(e_all[j * L:(j + 1) * L, :], wcat_ref[j],
                            preferred_element_type=jnp.float32)

    # 4) Mask invalid tail positions, max over time, then bias + ReLU
    #    (max_t relu(a_t + b) == relu(max_t(a_t) + b) for per-channel bias).
    acc = acc + mask_ref[...]
    feat = jnp.max(acc, axis=0, keepdims=True)                       # (1, G*C)
    feat = jnp.maximum(feat + bcat_ref[...], 0.0)

    # 5) FC (lane-padded) + log_softmax over the real classes; single dense store.
    logits = jnp.dot(feat, fcw_ref[...],
                     preferred_element_type=jnp.float32) + fcb_ref[...]
    lane = jax.lax.broadcasted_iota(jnp.int32, logits.shape, 1)
    logits = jnp.where(lane < num_classes, logits, -jnp.inf)
    m = jnp.max(logits, axis=1, keepdims=True)
    lse = m + jnp.log(jnp.sum(jnp.exp(logits - m), axis=1, keepdims=True))
    out_ref[...] = (logits - lse).reshape(out_ref.shape)


def textcnn_forward(ids, emb_table, conv_ws, conv_bs, fc_w, fc_b):
    B, L = ids.shape
    V, E = emb_table.shape
    ks = tuple(int(w.shape[0]) for w in conv_ws)
    assert len(conv_ws) == len(conv_bs), "conv weight/bias count mismatch"
    C = int(conv_ws[0].shape[-1])
    G = len(ks)
    GC = G * C
    kmax = max(ks)
    assert L >= kmax, "sequence shorter than largest conv window"
    NC = int(fc_w.shape[1])
    NC_pad = ((NC + 127) // 128) * 128

    f32 = jnp.float32

    # Fused conv weight: zero-pad each kernel to kmax taps, concat channel groups.
    wcat = jnp.zeros((kmax, E, GC), f32)
    for g, w in enumerate(conv_ws):
        wcat = wcat.at[:ks[g], :, g * C:(g + 1) * C].set(w.astype(f32))
    bcat = jnp.concatenate([jnp.reshape(bb, (1, C)).astype(f32) for bb in conv_bs],
                           axis=1)                                   # (1, G*C)

    # Stacked shift matrices: bigshift[j*L + t, s] = 1 iff s == t + j (< L).
    rows = jnp.arange(kmax * L)
    src = (rows % L) + (rows // L)
    bigshift = (jnp.arange(L)[None, :] == src[:, None]).astype(f32)  # (kmax*L, L)

    # -inf mask for conv positions past L - k, per channel group.
    kvec = jnp.repeat(jnp.asarray(ks, jnp.int32), C)                 # (G*C,)
    valid = jnp.arange(L)[:, None] <= (L - kvec)[None, :]            # (L, G*C)
    negmask = jnp.where(valid, 0.0, -jnp.inf).astype(f32)

    # Lane-pad the FC so the output store is a single unmasked 128-lane write.
    fcw_pad = jnp.zeros((GC, NC_pad), f32).at[:, :NC].set(fc_w.astype(f32))
    fcb_pad = jnp.zeros((1, NC_pad), f32).at[:, :NC].set(
        jnp.reshape(fc_b, (1, NC)).astype(f32))

    # PyTorch's nn.Embedding would raise on out-of-range ids; clamp to stay safe
    # for the HBM row DMA.
    ids = jnp.clip(ids.astype(jnp.int32), 0, V - 1)

    kernel = functools.partial(textcnn_kernel, num_classes=NC)
    grid_spec = pltpu.PrefetchScalarGridSpec(
        num_scalar_prefetch=1,
        grid=(B,),
        in_specs=[
            pl.BlockSpec(memory_space=pl.ANY),                       # embedding table (HBM)
            pl.BlockSpec((kmax * L, L), lambda b, ids: (0, 0)),      # shift matrices
            pl.BlockSpec((kmax, E, GC), lambda b, ids: (0, 0, 0)),   # fused conv weight
            pl.BlockSpec((1, GC), lambda b, ids: (0, 0)),            # fused conv bias
            pl.BlockSpec((L, GC), lambda b, ids: (0, 0)),            # validity mask
            pl.BlockSpec((GC, NC_pad), lambda b, ids: (0, 0)),       # fc weight (padded)
            pl.BlockSpec((1, NC_pad), lambda b, ids: (0, 0)),        # fc bias (padded)
        ],
        out_specs=pl.BlockSpec((1, 1, NC_pad), lambda b, ids: (b, 0, 0)),
        scratch_shapes=[pltpu.VMEM((L, E), f32),
                        pltpu.SemaphoreType.DMA((L,))],
    )
    out_pad = pl.pallas_call(
        kernel,
        out_shape=jax.ShapeDtypeStruct((B, 1, NC_pad), f32),
        grid_spec=grid_spec,
        compiler_params=pltpu.CompilerParams(
            dimension_semantics=("parallel",)),
    )(ids, emb_table.astype(f32), bigshift, wcat, bcat, negmask, fcw_pad, fcb_pad)
    return out_pad[:, 0, :NC]


def textcnn_reference(ids, emb_table, conv_ws, conv_bs, fc_w, fc_b):
    emb = emb_table[ids]                                             # (B, L, E)
    L = emb.shape[1]
    feats = []
    for w, b in zip(conv_ws, conv_bs):
        k = w.shape[0]
        l_out = L - k + 1
        conv = sum(jnp.einsum('ble,ec->blc', emb[:, j:j + l_out, :], w[j])
                   for j in range(k)) + b
        conv = jnp.maximum(conv, 0.0)
        feats.append(conv.max(axis=1))
    x = jnp.concatenate(feats, axis=1)
    logits = x @ fc_w + fc_b
    return jax.nn.log_softmax(logits, axis=1)


if __name__ == "__main__":
    # Small config consistent with TextCNN.__init__
    B, L = 2, 16           # batch, sequence length
    V, E = 50, 32          # vocab_size, embedding_size
    C = 8                  # kenel_num
    KS = (3, 4, 5)         # kenel_size
    NC = 4                 # num_classes

    key = jax.random.PRNGKey(0)
    k_ids, k_tbl, k_cw, k_cb, k_fw, k_fb = jax.random.split(key, 6)

    ids = jax.random.randint(k_ids, (B, L), 0, V, dtype=jnp.int32)
    emb_table = 0.1 * jax.random.normal(k_tbl, (V, E), dtype=jnp.float32)

    conv_ws, conv_bs = [], []
    for i, k in enumerate(KS):
        kw = jax.random.fold_in(k_cw, i)
        kb = jax.random.fold_in(k_cb, i)
        # PyTorch conv weight is (C, 1, k, E); stored here as (k, E, C).
        conv_ws.append(0.1 * jax.random.normal(kw, (k, E, C), dtype=jnp.float32))
        conv_bs.append(0.1 * jax.random.normal(kb, (1, C), dtype=jnp.float32))

    # PyTorch fc weight is (NC, len(KS)*C); stored pre-transposed.
    fc_w = 0.1 * jax.random.normal(k_fw, (len(KS) * C, NC), dtype=jnp.float32)
    fc_b = 0.1 * jax.random.normal(k_fb, (1, NC), dtype=jnp.float32)

    out = textcnn_forward(ids, emb_table, conv_ws, conv_bs, fc_w, fc_b)
    jax.block_until_ready(out)

    ref = textcnn_reference(ids, emb_table, conv_ws, conv_bs, fc_w, fc_b)
    assert out.shape == (B, NC)
    assert jnp.allclose(out, ref, atol=1e-4), (out, ref)

    print("KERNEL_OK")
</pallas_src>

<mosaic_0001>
module attributes {stable_mosaic.version = 11 : i64} {
  func.func @textcnn_kernel(%arg0: i32, %arg1: memref<2x16xi32, #tpu.memory_space<smem>>, %arg2: memref<50x32xf32, #tpu.memory_space<any>>, %arg3: memref<80x16xf32, #tpu.memory_space<vmem>>, %arg4: memref<5x32x24xf32, #tpu.memory_space<vmem>>, %arg5: memref<1x24xf32, #tpu.memory_space<vmem>>, %arg6: memref<16x24xf32, #tpu.memory_space<vmem>>, %arg7: memref<24x128xf32, #tpu.memory_space<vmem>>, %arg8: memref<1x128xf32, #tpu.memory_space<vmem>>, %arg9: memref<1x1x128xf32, #tpu.memory_space<vmem>>, %arg10: memref<16x32xf32, #tpu.memory_space<vmem>>, %arg11: memref<16x!tpu.dma_semaphore, #tpu.memory_space<semaphore_mem>>) attributes {dimension_semantics = [#tpu.dimension_semantics<parallel>], iteration_bounds = array<i64: 2>, scalar_prefetch = 1 : i64, scratch_operands = 2 : i64, tpu.core_type = #tpu.core_type<tc>, window_params = [{}, {pipeline_mode = #tpu.pipeline_mode<synchronous>, transform_indices = @transform_1, window_bounds = array<i64: 80, 16>}, {pipeline_mode = #tpu.pipeline_mode<synchronous>, transform_indices = @transform_2, window_bounds = array<i64: 5, 32, 24>}, {pipeline_mode = #tpu.pipeline_mode<synchronous>, transform_indices = @transform_3, window_bounds = array<i64: 1, 24>}, {pipeline_mode = #tpu.pipeline_mode<synchronous>, transform_indices = @transform_4, window_bounds = array<i64: 16, 24>}, {pipeline_mode = #tpu.pipeline_mode<synchronous>, transform_indices = @transform_5, window_bounds = array<i64: 24, 128>}, {pipeline_mode = #tpu.pipeline_mode<synchronous>, transform_indices = @transform_6, window_bounds = array<i64: 1, 128>}, {transform_indices = @transform_7, window_bounds = array<i64: 1, 1, 128>}]} {
    %0 = arith.index_cast %arg0 : i32 to index
    %c0 = arith.constant 0 : index
    %1 = memref.load %arg1[%0, %c0] : memref<2x16xi32, #tpu.memory_space<smem>>
    %c0_i32 = arith.constant 0 : i32
    %c0_i32_0 = arith.constant 0 : i32
    %2 = tpu.memref_slice %arg2[%1, %c0_i32_0] : memref<50x32xf32, #tpu.memory_space<any>> -> memref<1x32xf32, #tpu.memory_space<any>>
    %c0_i32_1 = arith.constant 0 : i32
    %c0_i32_2 = arith.constant 0 : i32
    %3 = tpu.memref_slice %arg10[%c0_i32_1, %c0_i32_2] : memref<16x32xf32, #tpu.memory_space<vmem>> -> memref<1x32xf32, #tpu.memory_space<vmem>>
    %4 = tpu.memref_slice %arg11[%c0_i32] : memref<16x!tpu.dma_semaphore, #tpu.memory_space<semaphore_mem>> -> memref<1x!tpu.dma_semaphore, #tpu.memory_space<semaphore_mem>>
    %5 = tpu.memref_squeeze %4 : memref<1x!tpu.dma_semaphore, #tpu.memory_space<semaphore_mem>> -> memref<!tpu.dma_semaphore, #tpu.memory_space<semaphore_mem>>
    tpu.enqueue_dma source(%2 : memref<1x32xf32, #tpu.memory_space<any>>) target(%3 : memref<1x32xf32, #tpu.memory_space<vmem>>) target_semaphore(%5 : memref<!tpu.dma_semaphore, #tpu.memory_space<semaphore_mem>>)
    %6 = arith.index_cast %arg0 : i32 to index
    %c1 = arith.constant 1 : index
    %7 = memref.load %arg1[%6, %c1] : memref<2x16xi32, #tpu.memory_space<smem>>
    %c1_i32 = arith.constant 1 : i32
    %c0_i32_3 = arith.constant 0 : i32
    %8 = tpu.memref_slice %arg2[%7, %c0_i32_3] : memref<50x32xf32, #tpu.memory_space<any>> -> memref<1x32xf32, #tpu.memory_space<any>>
    %c1_i32_4 = arith.constant 1 : i32
    %c0_i32_5 = arith.constant 0 : i32
    %9 = tpu.memref_slice %arg10[%c1_i32_4, %c0_i32_5] : memref<16x32xf32, #tpu.memory_space<vmem>> -> memref<1x32xf32, #tpu.memory_space<vmem>>
    %10 = tpu.memref_slice %arg11[%c1_i32] : memref<16x!tpu.dma_semaphore, #tpu.memory_space<semaphore_mem>> -> memref<1x!tpu.dma_semaphore, #tpu.memory_space<semaphore_mem>>
    %11 = tpu.memref_squeeze %10 : memref<1x!tpu.dma_semaphore, #tpu.memory_space<semaphore_mem>> -> memref<!tpu.dma_semaphore, #tpu.memory_space<semaphore_mem>>
    tpu.enqueue_dma source(%8 : memref<1x32xf32, #tpu.memory_space<any>>) target(%9 : memref<1x32xf32, #tpu.memory_space<vmem>>) target_semaphore(%11 : memref<!tpu.dma_semaphore, #tpu.memory_space<semaphore_mem>>)
    %12 = arith.index_cast %arg0 : i32 to index
    %c2 = arith.constant 2 : index
    %13 = memref.load %arg1[%12, %c2] : memref<2x16xi32, #tpu.memory_space<smem>>
    %c2_i32 = arith.constant 2 : i32
    %c0_i32_6 = arith.constant 0 : i32
    %14 = tpu.memref_slice %arg2[%13, %c0_i32_6] : memref<50x32xf32, #tpu.memory_space<any>> -> memref<1x32xf32, #tpu.memory_space<any>>
    %c2_i32_7 = arith.constant 2 : i32
    %c0_i32_8 = arith.constant 0 : i32
    %15 = tpu.memref_slice %arg10[%c2_i32_7, %c0_i32_8] : memref<16x32xf32, #tpu.memory_space<vmem>> -> memref<1x32xf32, #tpu.memory_space<vmem>>
    %16 = tpu.memref_slice %arg11[%c2_i32] : memref<16x!tpu.dma_semaphore, #tpu.memory_space<semaphore_mem>> -> memref<1x!tpu.dma_semaphore, #tpu.memory_space<semaphore_mem>>
    %17 = tpu.memref_squeeze %16 : memref<1x!tpu.dma_semaphore, #tpu.memory_space<semaphore_mem>> -> memref<!tpu.dma_semaphore, #tpu.memory_space<semaphore_mem>>
    tpu.enqueue_dma source(%14 : memref<1x32xf32, #tpu.memory_space<any>>) target(%15 : memref<1x32xf32, #tpu.memory_space<vmem>>) target_semaphore(%17 : memref<!tpu.dma_semaphore, #tpu.memory_space<semaphore_mem>>)
    %18 = arith.index_cast %arg0 : i32 to index
    %c3 = arith.constant 3 : index
    %19 = memref.load %arg1[%18, %c3] : memref<2x16xi32, #tpu.memory_space<smem>>
    %c3_i32 = arith.constant 3 : i32
    %c0_i32_9 = arith.constant 0 : i32
    %20 = tpu.memref_slice %arg2[%19, %c0_i32_9] : memref<50x32xf32, #tpu.memory_space<any>> -> memref<1x32xf32, #tpu.memory_space<any>>
    %c3_i32_10 = arith.constant 3 : i32
    %c0_i32_11 = arith.constant 0 : i32
    %21 = tpu.memref_slice %arg10[%c3_i32_10, %c0_i32_11] : memref<16x32xf32, #tpu.memory_space<vmem>> -> memref<1x32xf32, #tpu.memory_space<vmem>>
    %22 = tpu.memref_slice %arg11[%c3_i32] : memref<16x!tpu.dma_semaphore, #tpu.memory_space<semaphore_mem>> -> memref<1x!tpu.dma_semaphore, #tpu.memory_space<semaphore_mem>>
    %23 = tpu.memref_squeeze %22 : memref<1x!tpu.dma_semaphore, #tpu.memory_space<semaphore_mem>> -> memref<!tpu.dma_semaphore, #tpu.memory_space<semaphore_mem>>
    tpu.enqueue_dma source(%20 : memref<1x32xf32, #tpu.memory_space<any>>) target(%21 : memref<1x32xf32, #tpu.memory_space<vmem>>) target_semaphore(%23 : memref<!tpu.dma_semaphore, #tpu.memory_space<semaphore_mem>>)
    %24 = arith.index_cast %arg0 : i32 to index
    %c4 = arith.constant 4 : index
    %25 = memref.load %arg1[%24, %c4] : memref<2x16xi32, #tpu.memory_space<smem>>
    %c4_i32 = arith.constant 4 : i32
    %c0_i32_12 = arith.constant 0 : i32
    %26 = tpu.memref_slice %arg2[%25, %c0_i32_12] : memref<50x32xf32, #tpu.memory_space<any>> -> memref<1x32xf32, #tpu.memory_space<any>>
    %c4_i32_13 = arith.constant 4 : i32
    %c0_i32_14 = arith.constant 0 : i32
    %27 = tpu.memref_slice %arg10[%c4_i32_13, %c0_i32_14] : memref<16x32xf32, #tpu.memory_space<vmem>> -> memref<1x32xf32, #tpu.memory_space<vmem>>
    %28 = tpu.memref_slice %arg11[%c4_i32] : memref<16x!tpu.dma_semaphore, #tpu.memory_space<semaphore_mem>> -> memref<1x!tpu.dma_semaphore, #tpu.memory_space<semaphore_mem>>
    %29 = tpu.memref_squeeze %28 : memref<1x!tpu.dma_semaphore, #tpu.memory_space<semaphore_mem>> -> memref<!tpu.dma_semaphore, #tpu.memory_space<semaphore_mem>>
    tpu.enqueue_dma source(%26 : memref<1x32xf32, #tpu.memory_space<any>>) target(%27 : memref<1x32xf32, #tpu.memory_space<vmem>>) target_semaphore(%29 : memref<!tpu.dma_semaphore, #tpu.memory_space<semaphore_mem>>)
    %30 = arith.index_cast %arg0 : i32 to index
    %c5 = arith.constant 5 : index
    %31 = memref.load %arg1[%30, %c5] : memref<2x16xi32, #tpu.memory_space<smem>>
    %c5_i32 = arith.constant 5 : i32
    %c0_i32_15 = arith.constant 0 : i32
    %32 = tpu.memref_slice %arg2[%31, %c0_i32_15] : memref<50x32xf32, #tpu.memory_space<any>> -> memref<1x32xf32, #tpu.memory_space<any>>
    %c5_i32_16 = arith.constant 5 : i32
    %c0_i32_17 = arith.constant 0 : i32
    %33 = tpu.memref_slice %arg10[%c5_i32_16, %c0_i32_17] : memref<16x32xf32, #tpu.memory_space<vmem>> -> memref<1x32xf32, #tpu.memory_space<vmem>>
    %34 = tpu.memref_slice %arg11[%c5_i32] : memref<16x!tpu.dma_semaphore, #tpu.memory_space<semaphore_mem>> -> memref<1x!tpu.dma_semaphore, #tpu.memory_space<semaphore_mem>>
    %35 = tpu.memref_squeeze %34 : memref<1x!tpu.dma_semaphore, #tpu.memory_space<semaphore_mem>> -> memref<!tpu.dma_semaphore, #tpu.memory_space<semaphore_mem>>
    tpu.enqueue_dma source(%32 : memref<1x32xf32, #tpu.memory_space<any>>) target(%33 : memref<1x32xf32, #tpu.memory_space<vmem>>) target_semaphore(%35 : memref<!tpu.dma_semaphore, #tpu.memory_space<semaphore_mem>>)
    %36 = arith.index_cast %arg0 : i32 to index
    %c6 = arith.constant 6 : index
    %37 = memref.load %arg1[%36, %c6] : memref<2x16xi32, #tpu.memory_space<smem>>
    %c6_i32 = arith.constant 6 : i32
    %c0_i32_18 = arith.constant 0 : i32
    %38 = tpu.memref_slice %arg2[%37, %c0_i32_18] : memref<50x32xf32, #tpu.memory_space<any>> -> memref<1x32xf32, #tpu.memory_space<any>>
    %c6_i32_19 = arith.constant 6 : i32
    %c0_i32_20 = arith.constant 0 : i32
    %39 = tpu.memref_slice %arg10[%c6_i32_19, %c0_i32_20] : memref<16x32xf32, #tpu.memory_space<vmem>> -> memref<1x32xf32, #tpu.memory_space<vmem>>
    %40 = tpu.memref_slice %arg11[%c6_i32] : memref<16x!tpu.dma_semaphore, #tpu.memory_space<semaphore_mem>> -> memref<1x!tpu.dma_semaphore, #tpu.memory_space<semaphore_mem>>
    %41 = tpu.memref_squeeze %40 : memref<1x!tpu.dma_semaphore, #tpu.memory_space<semaphore_mem>> -> memref<!tpu.dma_semaphore, #tpu.memory_space<semaphore_mem>>
    tpu.enqueue_dma source(%38 : memref<1x32xf32, #tpu.memory_space<any>>) target(%39 : memref<1x32xf32, #tpu.memory_space<vmem>>) target_semaphore(%41 : memref<!tpu.dma_semaphore, #tpu.memory_space<semaphore_mem>>)
    %42 = arith.index_cast %arg0 : i32 to index
    %c7 = arith.constant 7 : index
    %43 = memref.load %arg1[%42, %c7] : memref<2x16xi32, #tpu.memory_space<smem>>
    %c7_i32 = arith.constant 7 : i32
    %c0_i32_21 = arith.constant 0 : i32
    %44 = tpu.memref_slice %arg2[%43, %c0_i32_21] : memref<50x32xf32, #tpu.memory_space<any>> -> memref<1x32xf32, #tpu.memory_space<any>>
    %c7_i32_22 = arith.constant 7 : i32
    %c0_i32_23 = arith.constant 0 : i32
    %45 = tpu.memref_slice %arg10[%c7_i32_22, %c0_i32_23] : memref<16x32xf32, #tpu.memory_space<vmem>> -> memref<1x32xf32, #tpu.memory_space<vmem>>
    %46 = tpu.memref_slice %arg11[%c7_i32] : memref<16x!tpu.dma_semaphore, #tpu.memory_space<semaphore_mem>> -> memref<1x!tpu.dma_semaphore, #tpu.memory_space<semaphore_mem>>
    %47 = tpu.memref_squeeze %46 : memref<1x!tpu.dma_semaphore, #tpu.memory_space<semaphore_mem>> -> memref<!tpu.dma_semaphore, #tpu.memory_space<semaphore_mem>>
    tpu.enqueue_dma source(%44 : memref<1x32xf32, #tpu.memory_space<any>>) target(%45 : memref<1x32xf32, #tpu.memory_space<vmem>>) target_semaphore(%47 : memref<!tpu.dma_semaphore, #tpu.memory_space<semaphore_mem>>)
    %48 = arith.index_cast %arg0 : i32 to index
    %c8 = arith.constant 8 : index
    %49 = memref.load %arg1[%48, %c8] : memref<2x16xi32, #tpu.memory_space<smem>>
    %c8_i32 = arith.constant 8 : i32
    %c0_i32_24 = arith.constant 0 : i32
    %50 = tpu.memref_slice %arg2[%49, %c0_i32_24] : memref<50x32xf32, #tpu.memory_space<any>> -> memref<1x32xf32, #tpu.memory_space<any>>
    %c8_i32_25 = arith.constant 8 : i32
    %c0_i32_26 = arith.constant 0 : i32
    %51 = tpu.memref_slice %arg10[%c8_i32_25, %c0_i32_26] : memref<16x32xf32, #tpu.memory_space<vmem>> -> memref<1x32xf32, #tpu.memory_space<vmem>>
    %52 = tpu.memref_slice %arg11[%c8_i32] : memref<16x!tpu.dma_semaphore, #tpu.memory_space<semaphore_mem>> -> memref<1x!tpu.dma_semaphore, #tpu.memory_space<semaphore_mem>>
    %53 = tpu.memref_squeeze %52 : memref<1x!tpu.dma_semaphore, #tpu.memory_space<semaphore_mem>> -> memref<!tpu.dma_semaphore, #tpu.memory_space<semaphore_mem>>
    tpu.enqueue_dma source(%50 : memref<1x32xf32, #tpu.memory_space<any>>) target(%51 : memref<1x32xf32, #tpu.memory_space<vmem>>) target_semaphore(%53 : memref<!tpu.dma_semaphore, #tpu.memory_space<semaphore_mem>>)
    %54 = arith.index_cast %arg0 : i32 to index
    %c9 = arith.constant 9 : index
    %55 = memref.load %arg1[%54, %c9] : memref<2x16xi32, #tpu.memory_space<smem>>
    %c9_i32 = arith.constant 9 : i32
    %c0_i32_27 = arith.constant 0 : i32
    %56 = tpu.memref_slice %arg2[%55, %c0_i32_27] : memref<50x32xf32, #tpu.memory_space<any>> -> memref<1x32xf32, #tpu.memory_space<any>>
    %c9_i32_28 = arith.constant 9 : i32
    %c0_i32_29 = arith.constant 0 : i32
    %57 = tpu.memref_slice %arg10[%c9_i32_28, %c0_i32_29] : memref<16x32xf32, #tpu.memory_space<vmem>> -> memref<1x32xf32, #tpu.memory_space<vmem>>
    %58 = tpu.memref_slice %arg11[%c9_i32] : memref<16x!tpu.dma_semaphore, #tpu.memory_space<semaphore_mem>> -> memref<1x!tpu.dma_semaphore, #tpu.memory_space<semaphore_mem>>
    %59 = tpu.memref_squeeze %58 : memref<1x!tpu.dma_semaphore, #tpu.memory_space<semaphore_mem>> -> memref<!tpu.dma_semaphore, #tpu.memory_space<semaphore_mem>>
    tpu.enqueue_dma source(%56 : memref<1x32xf32, #tpu.memory_space<any>>) target(%57 : memref<1x32xf32, #tpu.memory_space<vmem>>) target_semaphore(%59 : memref<!tpu.dma_semaphore, #tpu.memory_space<semaphore_mem>>)
    %60 = arith.index_cast %arg0 : i32 to index
    %c10 = arith.constant 10 : index
    %61 = memref.load %arg1[%60, %c10] : memref<2x16xi32, #tpu.memory_space<smem>>
    %c10_i32 = arith.constant 10 : i32
    %c0_i32_30 = arith.constant 0 : i32
    %62 = tpu.memref_slice %arg2[%61, %c0_i32_30] : memref<50x32xf32, #tpu.memory_space<any>> -> memref<1x32xf32, #tpu.memory_space<any>>
    %c10_i32_31 = arith.constant 10 : i32
    %c0_i32_32 = arith.constant 0 : i32
    %63 = tpu.memref_slice %arg10[%c10_i32_31, %c0_i32_32] : memref<16x32xf32, #tpu.memory_space<vmem>> -> memref<1x32xf32, #tpu.memory_space<vmem>>
    %64 = tpu.memref_slice %arg11[%c10_i32] : memref<16x!tpu.dma_semaphore, #tpu.memory_space<semaphore_mem>> -> memref<1x!tpu.dma_semaphore, #tpu.memory_space<semaphore_mem>>
    %65 = tpu.memref_squeeze %64 : memref<1x!tpu.dma_semaphore, #tpu.memory_space<semaphore_mem>> -> memref<!tpu.dma_semaphore, #tpu.memory_space<semaphore_mem>>
    tpu.enqueue_dma source(%62 : memref<1x32xf32, #tpu.memory_space<any>>) target(%63 : memref<1x32xf32, #tpu.memory_space<vmem>>) target_semaphore(%65 : memref<!tpu.dma_semaphore, #tpu.memory_space<semaphore_mem>>)
    %66 = arith.index_cast %arg0 : i32 to index
    %c11 = arith.constant 11 : index
    %67 = memref.load %arg1[%66, %c11] : memref<2x16xi32, #tpu.memory_space<smem>>
    %c11_i32 = arith.constant 11 : i32
    %c0_i32_33 = arith.constant 0 : i32
    %68 = tpu.memref_slice %arg2[%67, %c0_i32_33] : memref<50x32xf32, #tpu.memory_space<any>> -> memref<1x32xf32, #tpu.memory_space<any>>
    %c11_i32_34 = arith.constant 11 : i32
    %c0_i32_35 = arith.constant 0 : i32
    %69 = tpu.memref_slice %arg10[%c11_i32_34, %c0_i32_35] : memref<16x32xf32, #tpu.memory_space<vmem>> -> memref<1x32xf32, #tpu.memory_space<vmem>>
    %70 = tpu.memref_slice %arg11[%c11_i32] : memref<16x!tpu.dma_semaphore, #tpu.memory_space<semaphore_mem>> -> memref<1x!tpu.dma_semaphore, #tpu.memory_space<semaphore_mem>>
    %71 = tpu.memref_squeeze %70 : memref<1x!tpu.dma_semaphore, #tpu.memory_space<semaphore_mem>> -> memref<!tpu.dma_semaphore, #tpu.memory_space<semaphore_mem>>
    tpu.enqueue_dma source(%68 : memref<1x32xf32, #tpu.memory_space<any>>) target(%69 : memref<1x32xf32, #tpu.memory_space<vmem>>) target_semaphore(%71 : memref<!tpu.dma_semaphore, #tpu.memory_space<semaphore_mem>>)
    %72 = arith.index_cast %arg0 : i32 to index
    %c12 = arith.constant 12 : index
    %73 = memref.load %arg1[%72, %c12] : memref<2x16xi32, #tpu.memory_space<smem>>
    %c12_i32 = arith.constant 12 : i32
    %c0_i32_36 = arith.constant 0 : i32
    %74 = tpu.memref_slice %arg2[%73, %c0_i32_36] : memref<50x32xf32, #tpu.memory_space<any>> -> memref<1x32xf32, #tpu.memory_space<any>>
    %c12_i32_37 = arith.constant 12 : i32
    %c0_i32_38 = arith.constant 0 : i32
    %75 = tpu.memref_slice %arg10[%c12_i32_37, %c0_i32_38] : memref<16x32xf32, #tpu.memory_space<vmem>> -> memref<1x32xf32, #tpu.memory_space<vmem>>
    %76 = tpu.memref_slice %arg11[%c12_i32] : memref<16x!tpu.dma_semaphore, #tpu.memory_space<semaphore_mem>> -> memref<1x!tpu.dma_semaphore, #tpu.memory_space<semaphore_mem>>
    %77 = tpu.memref_squeeze %76 : memref<1x!tpu.dma_semaphore, #tpu.memory_space<semaphore_mem>> -> memref<!tpu.dma_semaphore, #tpu.memory_space<semaphore_mem>>
    tpu.enqueue_dma source(%74 : memref<1x32xf32, #tpu.memory_space<any>>) target(%75 : memref<1x32xf32, #tpu.memory_space<vmem>>) target_semaphore(%77 : memref<!tpu.dma_semaphore, #tpu.memory_space<semaphore_mem>>)
    %78 = arith.index_cast %arg0 : i32 to index
    %c13 = arith.constant 13 : index
    %79 = memref.load %arg1[%78, %c13] : memref<2x16xi32, #tpu.memory_space<smem>>
    %c13_i32 = arith.constant 13 : i32
    %c0_i32_39 = arith.constant 0 : i32
    %80 = tpu.memref_slice %arg2[%79, %c0_i32_39] : memref<50x32xf32, #tpu.memory_space<any>> -> memref<1x32xf32, #tpu.memory_space<any>>
    %c13_i32_40 = arith.constant 13 : i32
    %c0_i32_41 = arith.constant 0 : i32
    %81 = tpu.memref_slice %arg10[%c13_i32_40, %c0_i32_41] : memref<16x32xf32, #tpu.memory_space<vmem>> -> memref<1x32xf32, #tpu.memory_space<vmem>>
    %82 = tpu.memref_slice %arg11[%c13_i32] : memref<16x!tpu.dma_semaphore, #tpu.memory_space<semaphore_mem>> -> memref<1x!tpu.dma_semaphore, #tpu.memory_space<semaphore_mem>>
    %83 = tpu.memref_squeeze %82 : memref<1x!tpu.dma_semaphore, #tpu.memory_space<semaphore_mem>> -> memref<!tpu.dma_semaphore, #tpu.memory_space<semaphore_mem>>
    tpu.enqueue_dma source(%80 : memref<1x32xf32, #tpu.memory_space<any>>) target(%81 : memref<1x32xf32, #tpu.memory_space<vmem>>) target_semaphore(%83 : memref<!tpu.dma_semaphore, #tpu.memory_space<semaphore_mem>>)
    %84 = arith.index_cast %arg0 : i32 to index
    %c14 = arith.constant 14 : index
    %85 = memref.load %arg1[%84, %c14] : memref<2x16xi32, #tpu.memory_space<smem>>
    %c14_i32 = arith.constant 14 : i32
    %c0_i32_42 = arith.constant 0 : i32
    %86 = tpu.memref_slice %arg2[%85, %c0_i32_42] : memref<50x32xf32, #tpu.memory_space<any>> -> memref<1x32xf32, #tpu.memory_space<any>>
    %c14_i32_43 = arith.constant 14 : i32
    %c0_i32_44 = arith.constant 0 : i32
    %87 = tpu.memref_slice %arg10[%c14_i32_43, %c0_i32_44] : memref<16x32xf32, #tpu.memory_space<vmem>> -> memref<1x32xf32, #tpu.memory_space<vmem>>
    %88 = tpu.memref_slice %arg11[%c14_i32] : memref<16x!tpu.dma_semaphore, #tpu.memory_space<semaphore_mem>> -> memref<1x!tpu.dma_semaphore, #tpu.memory_space<semaphore_mem>>
    %89 = tpu.memref_squeeze %88 : memref<1x!tpu.dma_semaphore, #tpu.memory_space<semaphore_mem>> -> memref<!tpu.dma_semaphore, #tpu.memory_space<semaphore_mem>>
    tpu.enqueue_dma source(%86 : memref<1x32xf32, #tpu.memory_space<any>>) target(%87 : memref<1x32xf32, #tpu.memory_space<vmem>>) target_semaphore(%89 : memref<!tpu.dma_semaphore, #tpu.memory_space<semaphore_mem>>)
    %90 = arith.index_cast %arg0 : i32 to index
    %c15 = arith.constant 15 : index
    %91 = memref.load %arg1[%90, %c15] : memref<2x16xi32, #tpu.memory_space<smem>>
    %c15_i32 = arith.constant 15 : i32
    %c0_i32_45 = arith.constant 0 : i32
    %92 = tpu.memref_slice %arg2[%91, %c0_i32_45] : memref<50x32xf32, #tpu.memory_space<any>> -> memref<1x32xf32, #tpu.memory_space<any>>
    %c15_i32_46 = arith.constant 15 : i32
    %c0_i32_47 = arith.constant 0 : i32
    %93 = tpu.memref_slice %arg10[%c15_i32_46, %c0_i32_47] : memref<16x32xf32, #tpu.memory_space<vmem>> -> memref<1x32xf32, #tpu.memory_space<vmem>>
    %94 = tpu.memref_slice %arg11[%c15_i32] : memref<16x!tpu.dma_semaphore, #tpu.memory_space<semaphore_mem>> -> memref<1x!tpu.dma_semaphore, #tpu.memory_space<semaphore_mem>>
    %95 = tpu.memref_squeeze %94 : memref<1x!tpu.dma_semaphore, #tpu.memory_space<semaphore_mem>> -> memref<!tpu.dma_semaphore, #tpu.memory_space<semaphore_mem>>
    tpu.enqueue_dma source(%92 : memref<1x32xf32, #tpu.memory_space<any>>) target(%93 : memref<1x32xf32, #tpu.memory_space<vmem>>) target_semaphore(%95 : memref<!tpu.dma_semaphore, #tpu.memory_space<semaphore_mem>>)
    %c0_i32_48 = arith.constant 0 : i32
    %c0_i32_49 = arith.constant 0 : i32
    %96 = tpu.memref_slice %arg2[%1, %c0_i32_49] : memref<50x32xf32, #tpu.memory_space<any>> -> memref<1x32xf32, #tpu.memory_space<any>>
    %c0_i32_50 = arith.constant 0 : i32
    %c0_i32_51 = arith.constant 0 : i32
    %97 = tpu.memref_slice %arg10[%c0_i32_50, %c0_i32_51] : memref<16x32xf32, #tpu.memory_space<vmem>> -> memref<1x32xf32, #tpu.memory_space<vmem>>
    %98 = tpu.memref_slice %arg11[%c0_i32_48] : memref<16x!tpu.dma_semaphore, #tpu.memory_space<semaphore_mem>> -> memref<1x!tpu.dma_semaphore, #tpu.memory_space<semaphore_mem>>
    %99 = tpu.memref_squeeze %98 : memref<1x!tpu.dma_semaphore, #tpu.memory_space<semaphore_mem>> -> memref<!tpu.dma_semaphore, #tpu.memory_space<semaphore_mem>>
    tpu.wait_dma2 semaphore(%99 : memref<!tpu.dma_semaphore, #tpu.memory_space<semaphore_mem>>) src(%96 : memref<1x32xf32, #tpu.memory_space<any>>) dst(%97 : memref<1x32xf32, #tpu.memory_space<vmem>>)
    %c1_i32_52 = arith.constant 1 : i32
    %c0_i32_53 = arith.constant 0 : i32
    %100 = tpu.memref_slice %arg2[%7, %c0_i32_53] : memref<50x32xf32, #tpu.memory_space<any>> -> memref<1x32xf32, #tpu.memory_space<any>>
    %c1_i32_54 = arith.constant 1 : i32
    %c0_i32_55 = arith.constant 0 : i32
    %101 = tpu.memref_slice %arg10[%c1_i32_54, %c0_i32_55] : memref<16x32xf32, #tpu.memory_space<vmem>> -> memref<1x32xf32, #tpu.memory_space<vmem>>
    %102 = tpu.memref_slice %arg11[%c1_i32_52] : memref<16x!tpu.dma_semaphore, #tpu.memory_space<semaphore_mem>> -> memref<1x!tpu.dma_semaphore, #tpu.memory_space<semaphore_mem>>
    %103 = tpu.memref_squeeze %102 : memref<1x!tpu.dma_semaphore, #tpu.memory_space<semaphore_mem>> -> memref<!tpu.dma_semaphore, #tpu.memory_space<semaphore_mem>>
    tpu.wait_dma2 semaphore(%103 : memref<!tpu.dma_semaphore, #tpu.memory_space<semaphore_mem>>) src(%100 : memref<1x32xf32, #tpu.memory_space<any>>) dst(%101 : memref<1x32xf32, #tpu.memory_space<vmem>>)
    %c2_i32_56 = arith.constant 2 : i32
    %c0_i32_57 = arith.constant 0 : i32
    %104 = tpu.memref_slice %arg2[%13, %c0_i32_57] : memref<50x32xf32, #tpu.memory_space<any>> -> memref<1x32xf32, #tpu.memory_space<any>>
    %c2_i32_58 = arith.constant 2 : i32
    %c0_i32_59 = arith.constant 0 : i32
    %105 = tpu.memref_slice %arg10[%c2_i32_58, %c0_i32_59] : memref<16x32xf32, #tpu.memory_space<vmem>> -> memref<1x32xf32, #tpu.memory_space<vmem>>
    %106 = tpu.memref_slice %arg11[%c2_i32_56] : memref<16x!tpu.dma_semaphore, #tpu.memory_space<semaphore_mem>> -> memref<1x!tpu.dma_semaphore, #tpu.memory_space<semaphore_mem>>
    %107 = tpu.memref_squeeze %106 : memref<1x!tpu.dma_semaphore, #tpu.memory_space<semaphore_mem>> -> memref<!tpu.dma_semaphore, #tpu.memory_space<semaphore_mem>>
    tpu.wait_dma2 semaphore(%107 : memref<!tpu.dma_semaphore, #tpu.memory_space<semaphore_mem>>) src(%104 : memref<1x32xf32, #tpu.memory_space<any>>) dst(%105 : memref<1x32xf32, #tpu.memory_space<vmem>>)
    %c3_i32_60 = arith.constant 3 : i32
    %c0_i32_61 = arith.constant 0 : i32
    %108 = tpu.memref_slice %arg2[%19, %c0_i32_61] : memref<50x32xf32, #tpu.memory_space<any>> -> memref<1x32xf32, #tpu.memory_space<any>>
    %c3_i32_62 = arith.constant 3 : i32
    %c0_i32_63 = arith.constant 0 : i32
    %109 = tpu.memref_slice %arg10[%c3_i32_62, %c0_i32_63] : memref<16x32xf32, #tpu.memory_space<vmem>> -> memref<1x32xf32, #tpu.memory_space<vmem>>
    %110 = tpu.memref_slice %arg11[%c3_i32_60] : memref<16x!tpu.dma_semaphore, #tpu.memory_space<semaphore_mem>> -> memref<1x!tpu.dma_semaphore, #tpu.memory_space<semaphore_mem>>
    %111 = tpu.memref_squeeze %110 : memref<1x!tpu.dma_semaphore, #tpu.memory_space<semaphore_mem>> -> memref<!tpu.dma_semaphore, #tpu.memory_space<semaphore_mem>>
    tpu.wait_dma2 semaphore(%111 : memref<!tpu.dma_semaphore, #tpu.memory_space<semaphore_mem>>) src(%108 : memref<1x32xf32, #tpu.memory_space<any>>) dst(%109 : memref<1x32xf32, #tpu.memory_space<vmem>>)
    %c4_i32_64 = arith.constant 4 : i32
    %c0_i32_65 = arith.constant 0 : i32
    %112 = tpu.memref_slice %arg2[%25, %c0_i32_65] : memref<50x32xf32, #tpu.memory_space<any>> -> memref<1x32xf32, #tpu.memory_space<any>>
    %c4_i32_66 = arith.constant 4 : i32
    %c0_i32_67 = arith.constant 0 : i32
    %113 = tpu.memref_slice %arg10[%c4_i32_66, %c0_i32_67] : memref<16x32xf32, #tpu.memory_space<vmem>> -> memref<1x32xf32, #tpu.memory_space<vmem>>
    %114 = tpu.memref_slice %arg11[%c4_i32_64] : memref<16x!tpu.dma_semaphore, #tpu.memory_space<semaphore_mem>> -> memref<1x!tpu.dma_semaphore, #tpu.memory_space<semaphore_mem>>
    %115 = tpu.memref_squeeze %114 : memref<1x!tpu.dma_semaphore, #tpu.memory_space<semaphore_mem>> -> memref<!tpu.dma_semaphore, #tpu.memory_space<semaphore_mem>>
    tpu.wait_dma2 semaphore(%115 : memref<!tpu.dma_semaphore, #tpu.memory_space<semaphore_mem>>) src(%112 : memref<1x32xf32, #tpu.memory_space<any>>) dst(%113 : memref<1x32xf32, #tpu.memory_space<vmem>>)
    %c5_i32_68 = arith.constant 5 : i32
    %c0_i32_69 = arith.constant 0 : i32
    %116 = tpu.memref_slice %arg2[%31, %c0_i32_69] : memref<50x32xf32, #tpu.memory_space<any>> -> memref<1x32xf32, #tpu.memory_space<any>>
    %c5_i32_70 = arith.constant 5 : i32
    %c0_i32_71 = arith.constant 0 : i32
    %117 = tpu.memref_slice %arg10[%c5_i32_70, %c0_i32_71] : memref<16x32xf32, #tpu.memory_space<vmem>> -> memref<1x32xf32, #tpu.memory_space<vmem>>
    %118 = tpu.memref_slice %arg11[%c5_i32_68] : memref<16x!tpu.dma_semaphore, #tpu.memory_space<semaphore_mem>> -> memref<1x!tpu.dma_semaphore, #tpu.memory_space<semaphore_mem>>
    %119 = tpu.memref_squeeze %118 : memref<1x!tpu.dma_semaphore, #tpu.memory_space<semaphore_mem>> -> memref<!tpu.dma_semaphore, #tpu.memory_space<semaphore_mem>>
    tpu.wait_dma2 semaphore(%119 : memref<!tpu.dma_semaphore, #tpu.memory_space<semaphore_mem>>) src(%116 : memref<1x32xf32, #tpu.memory_space<any>>) dst(%117 : memref<1x32xf32, #tpu.memory_space<vmem>>)
    %c6_i32_72 = arith.constant 6 : i32
    %c0_i32_73 = arith.constant 0 : i32
    %120 = tpu.memref_slice %arg2[%37, %c0_i32_73] : memref<50x32xf32, #tpu.memory_space<any>> -> memref<1x32xf32, #tpu.memory_space<any>>
    %c6_i32_74 = arith.constant 6 : i32
    %c0_i32_75 = arith.constant 0 : i32
    %121 = tpu.memref_slice %arg10[%c6_i32_74, %c0_i32_75] : memref<16x32xf32, #tpu.memory_space<vmem>> -> memref<1x32xf32, #tpu.memory_space<vmem>>
    %122 = tpu.memref_slice %arg11[%c6_i32_72] : memref<16x!tpu.dma_semaphore, #tpu.memory_space<semaphore_mem>> -> memref<1x!tpu.dma_semaphore, #tpu.memory_space<semaphore_mem>>
    %123 = tpu.memref_squeeze %122 : memref<1x!tpu.dma_semaphore, #tpu.memory_space<semaphore_mem>> -> memref<!tpu.dma_semaphore, #tpu.memory_space<semaphore_mem>>
    tpu.wait_dma2 semaphore(%123 : memref<!tpu.dma_semaphore, #tpu.memory_space<semaphore_mem>>) src(%120 : memref<1x32xf32, #tpu.memory_space<any>>) dst(%121 : memref<1x32xf32, #tpu.memory_space<vmem>>)
    %c7_i32_76 = arith.constant 7 : i32
    %c0_i32_77 = arith.constant 0 : i32
    %124 = tpu.memref_slice %arg2[%43, %c0_i32_77] : memref<50x32xf32, #tpu.memory_space<any>> -> memref<1x32xf32, #tpu.memory_space<any>>
    %c7_i32_78 = arith.constant 7 : i32
    %c0_i32_79 = arith.constant 0 : i32
    %125 = tpu.memref_slice %arg10[%c7_i32_78, %c0_i32_79] : memref<16x32xf32, #tpu.memory_space<vmem>> -> memref<1x32xf32, #tpu.memory_space<vmem>>
    %126 = tpu.memref_slice %arg11[%c7_i32_76] : memref<16x!tpu.dma_semaphore, #tpu.memory_space<semaphore_mem>> -> memref<1x!tpu.dma_semaphore, #tpu.memory_space<semaphore_mem>>
    %127 = tpu.memref_squeeze %126 : memref<1x!tpu.dma_semaphore, #tpu.memory_space<semaphore_mem>> -> memref<!tpu.dma_semaphore, #tpu.memory_space<semaphore_mem>>
    tpu.wait_dma2 semaphore(%127 : memref<!tpu.dma_semaphore, #tpu.memory_space<semaphore_mem>>) src(%124 : memref<1x32xf32, #tpu.memory_space<any>>) dst(%125 : memref<1x32xf32, #tpu.memory_space<vmem>>)
    %c8_i32_80 = arith.constant 8 : i32
    %c0_i32_81 = arith.constant 0 : i32
    %128 = tpu.memref_slice %arg2[%49, %c0_i32_81] : memref<50x32xf32, #tpu.memory_space<any>> -> memref<1x32xf32, #tpu.memory_space<any>>
    %c8_i32_82 = arith.constant 8 : i32
    %c0_i32_83 = arith.constant 0 : i32
    %129 = tpu.memref_slice %arg10[%c8_i32_82, %c0_i32_83] : memref<16x32xf32, #tpu.memory_space<vmem>> -> memref<1x32xf32, #tpu.memory_space<vmem>>
    %130 = tpu.memref_slice %arg11[%c8_i32_80] : memref<16x!tpu.dma_semaphore, #tpu.memory_space<semaphore_mem>> -> memref<1x!tpu.dma_semaphore, #tpu.memory_space<semaphore_mem>>
    %131 = tpu.memref_squeeze %130 : memref<1x!tpu.dma_semaphore, #tpu.memory_space<semaphore_mem>> -> memref<!tpu.dma_semaphore, #tpu.memory_space<semaphore_mem>>
    tpu.wait_dma2 semaphore(%131 : memref<!tpu.dma_semaphore, #tpu.memory_space<semaphore_mem>>) src(%128 : memref<1x32xf32, #tpu.memory_space<any>>) dst(%129 : memref<1x32xf32, #tpu.memory_space<vmem>>)
    %c9_i32_84 = arith.constant 9 : i32
    %c0_i32_85 = arith.constant 0 : i32
    %132 = tpu.memref_slice %arg2[%55, %c0_i32_85] : memref<50x32xf32, #tpu.memory_space<any>> -> memref<1x32xf32, #tpu.memory_space<any>>
    %c9_i32_86 = arith.constant 9 : i32
    %c0_i32_87 = arith.constant 0 : i32
    %133 = tpu.memref_slice %arg10[%c9_i32_86, %c0_i32_87] : memref<16x32xf32, #tpu.memory_space<vmem>> -> memref<1x32xf32, #tpu.memory_space<vmem>>
    %134 = tpu.memref_slice %arg11[%c9_i32_84] : memref<16x!tpu.dma_semaphore, #tpu.memory_space<semaphore_mem>> -> memref<1x!tpu.dma_semaphore, #tpu.memory_space<semaphore_mem>>
    %135 = tpu.memref_squeeze %134 : memref<1x!tpu.dma_semaphore, #tpu.memory_space<semaphore_mem>> -> memref<!tpu.dma_semaphore, #tpu.memory_space<semaphore_mem>>
    tpu.wait_dma2 semaphore(%135 : memref<!tpu.dma_semaphore, #tpu.memory_space<semaphore_mem>>) src(%132 : memref<1x32xf32, #tpu.memory_space<any>>) dst(%133 : memref<1x32xf32, #tpu.memory_space<vmem>>)
    %c10_i32_88 = arith.constant 10 : i32
    %c0_i32_89 = arith.constant 0 : i32
    %136 = tpu.memref_slice %arg2[%61, %c0_i32_89] : memref<50x32xf32, #tpu.memory_space<any>> -> memref<1x32xf32, #tpu.memory_space<any>>
    %c10_i32_90 = arith.constant 10 : i32
    %c0_i32_91 = arith.constant 0 : i32
    %137 = tpu.memref_slice %arg10[%c10_i32_90, %c0_i32_91] : memref<16x32xf32, #tpu.memory_space<vmem>> -> memref<1x32xf32, #tpu.memory_space<vmem>>
    %138 = tpu.memref_slice %arg11[%c10_i32_88] : memref<16x!tpu.dma_semaphore, #tpu.memory_space<semaphore_mem>> -> memref<1x!tpu.dma_semaphore, #tpu.memory_space<semaphore_mem>>
    %139 = tpu.memref_squeeze %138 : memref<1x!tpu.dma_semaphore, #tpu.memory_space<semaphore_mem>> -> memref<!tpu.dma_semaphore, #tpu.memory_space<semaphore_mem>>
    tpu.wait_dma2 semaphore(%139 : memref<!tpu.dma_semaphore, #tpu.memory_space<semaphore_mem>>) src(%136 : memref<1x32xf32, #tpu.memory_space<any>>) dst(%137 : memref<1x32xf32, #tpu.memory_space<vmem>>)
    %c11_i32_92 = arith.constant 11 : i32
    %c0_i32_93 = arith.constant 0 : i32
    %140 = tpu.memref_slice %arg2[%67, %c0_i32_93] : memref<50x32xf32, #tpu.memory_space<any>> -> memref<1x32xf32, #tpu.memory_space<any>>
    %c11_i32_94 = arith.constant 11 : i32
    %c0_i32_95 = arith.constant 0 : i32
    %141 = tpu.memref_slice %arg10[%c11_i32_94, %c0_i32_95] : memref<16x32xf32, #tpu.memory_space<vmem>> -> memref<1x32xf32, #tpu.memory_space<vmem>>
    %142 = tpu.memref_slice %arg11[%c11_i32_92] : memref<16x!tpu.dma_semaphore, #tpu.memory_space<semaphore_mem>> -> memref<1x!tpu.dma_semaphore, #tpu.memory_space<semaphore_mem>>
    %143 = tpu.memref_squeeze %142 : memref<1x!tpu.dma_semaphore, #tpu.memory_space<semaphore_mem>> -> memref<!tpu.dma_semaphore, #tpu.memory_space<semaphore_mem>>
    tpu.wait_dma2 semaphore(%143 : memref<!tpu.dma_semaphore, #tpu.memory_space<semaphore_mem>>) src(%140 : memref<1x32xf32, #tpu.memory_space<any>>) dst(%141 : memref<1x32xf32, #tpu.memory_space<vmem>>)
    %c12_i32_96 = arith.constant 12 : i32
    %c0_i32_97 = arith.constant 0 : i32
    %144 = tpu.memref_slice %arg2[%73, %c0_i32_97] : memref<50x32xf32, #tpu.memory_space<any>> -> memref<1x32xf32, #tpu.memory_space<any>>
    %c12_i32_98 = arith.constant 12 : i32
    %c0_i32_99 = arith.constant 0 : i32
    %145 = tpu.memref_slice %arg10[%c12_i32_98, %c0_i32_99] : memref<16x32xf32, #tpu.memory_space<vmem>> -> memref<1x32xf32, #tpu.memory_space<vmem>>
    %146 = tpu.memref_slice %arg11[%c12_i32_96] : memref<16x!tpu.dma_semaphore, #tpu.memory_space<semaphore_mem>> -> memref<1x!tpu.dma_semaphore, #tpu.memory_space<semaphore_mem>>
    %147 = tpu.memref_squeeze %146 : memref<1x!tpu.dma_semaphore, #tpu.memory_space<semaphore_mem>> -> memref<!tpu.dma_semaphore, #tpu.memory_space<semaphore_mem>>
    tpu.wait_dma2 semaphore(%147 : memref<!tpu.dma_semaphore, #tpu.memory_space<semaphore_mem>>) src(%144 : memref<1x32xf32, #tpu.memory_space<any>>) dst(%145 : memref<1x32xf32, #tpu.memory_space<vmem>>)
    %c13_i32_100 = arith.constant 13 : i32
    %c0_i32_101 = arith.constant 0 : i32
    %148 = tpu.memref_slice %arg2[%79, %c0_i32_101] : memref<50x32xf32, #tpu.memory_space<any>> -> memref<1x32xf32, #tpu.memory_space<any>>
    %c13_i32_102 = arith.constant 13 : i32
    %c0_i32_103 = arith.constant 0 : i32
    %149 = tpu.memref_slice %arg10[%c13_i32_102, %c0_i32_103] : memref<16x32xf32, #tpu.memory_space<vmem>> -> memref<1x32xf32, #tpu.memory_space<vmem>>
    %150 = tpu.memref_slice %arg11[%c13_i32_100] : memref<16x!tpu.dma_semaphore, #tpu.memory_space<semaphore_mem>> -> memref<1x!tpu.dma_semaphore, #tpu.memory_space<semaphore_mem>>
    %151 = tpu.memref_squeeze %150 : memref<1x!tpu.dma_semaphore, #tpu.memory_space<semaphore_mem>> -> memref<!tpu.dma_semaphore, #tpu.memory_space<semaphore_mem>>
    tpu.wait_dma2 semaphore(%151 : memref<!tpu.dma_semaphore, #tpu.memory_space<semaphore_mem>>) src(%148 : memref<1x32xf32, #tpu.memory_space<any>>) dst(%149 : memref<1x32xf32, #tpu.memory_space<vmem>>)
    %c14_i32_104 = arith.constant 14 : i32
    %c0_i32_105 = arith.constant 0 : i32
    %152 = tpu.memref_slice %arg2[%85, %c0_i32_105] : memref<50x32xf32, #tpu.memory_space<any>> -> memref<1x32xf32, #tpu.memory_space<any>>
    %c14_i32_106 = arith.constant 14 : i32
    %c0_i32_107 = arith.constant 0 : i32
    %153 = tpu.memref_slice %arg10[%c14_i32_106, %c0_i32_107] : memref<16x32xf32, #tpu.memory_space<vmem>> -> memref<1x32xf32, #tpu.memory_space<vmem>>
    %154 = tpu.memref_slice %arg11[%c14_i32_104] : memref<16x!tpu.dma_semaphore, #tpu.memory_space<semaphore_mem>> -> memref<1x!tpu.dma_semaphore, #tpu.memory_space<semaphore_mem>>
    %155 = tpu.memref_squeeze %154 : memref<1x!tpu.dma_semaphore, #tpu.memory_space<semaphore_mem>> -> memref<!tpu.dma_semaphore, #tpu.memory_space<semaphore_mem>>
    tpu.wait_dma2 semaphore(%155 : memref<!tpu.dma_semaphore, #tpu.memory_space<semaphore_mem>>) src(%152 : memref<1x32xf32, #tpu.memory_space<any>>) dst(%153 : memref<1x32xf32, #tpu.memory_space<vmem>>)
    %c15_i32_108 = arith.constant 15 : i32
    %c0_i32_109 = arith.constant 0 : i32
    %156 = tpu.memref_slice %arg2[%91, %c0_i32_109] : memref<50x32xf32, #tpu.memory_space<any>> -> memref<1x32xf32, #tpu.memory_space<any>>
    %c15_i32_110 = arith.constant 15 : i32
    %c0_i32_111 = arith.constant 0 : i32
    %157 = tpu.memref_slice %arg10[%c15_i32_110, %c0_i32_111] : memref<16x32xf32, #tpu.memory_space<vmem>> -> memref<1x32xf32, #tpu.memory_space<vmem>>
    %158 = tpu.memref_slice %arg11[%c15_i32_108] : memref<16x!tpu.dma_semaphore, #tpu.memory_space<semaphore_mem>> -> memref<1x!tpu.dma_semaphore, #tpu.memory_space<semaphore_mem>>
    %159 = tpu.memref_squeeze %158 : memref<1x!tpu.dma_semaphore, #tpu.memory_space<semaphore_mem>> -> memref<!tpu.dma_semaphore, #tpu.memory_space<semaphore_mem>>
    tpu.wait_dma2 semaphore(%159 : memref<!tpu.dma_semaphore, #tpu.memory_space<semaphore_mem>>) src(%156 : memref<1x32xf32, #tpu.memory_space<any>>) dst(%157 : memref<1x32xf32, #tpu.memory_space<vmem>>)
    %c0_112 = arith.constant 0 : index
    %c0_113 = arith.constant 0 : index
    %160 = vector.load %arg10[%c0_112, %c0_113] : memref<16x32xf32, #tpu.memory_space<vmem>>, vector<16x32xf32>
    %c0_114 = arith.constant 0 : index
    %c0_115 = arith.constant 0 : index
    %161 = vector.load %arg3[%c0_114, %c0_115] : memref<80x16xf32, #tpu.memory_space<vmem>>, vector<80x16xf32>
    %cst = arith.constant dense<0.000000e+00> : vector<80x32xf32>
    %162 = tpu.matmul %161, %160, %cst {dimension_numbers = #tpu.dot_dimension_numbers<[1], [0], [0], [1], [0, 0, 1, 1], [], []>} : vector<80x16xf32>, vector<16x32xf32>, vector<80x32xf32> -> vector<80x32xf32>
    %cst_116 = arith.constant 0.000000e+00 : f32
    %163 = vector.broadcast %cst_116 : f32 to vector<16x24xf32>
    %164 = vector.extract_strided_slice %162 {offsets = [0, 0], sizes = [16, 32], strides = [1, 1]} : vector<80x32xf32> to vector<16x32xf32>
    %c0_117 = arith.constant 0 : index
    %c0_118 = arith.constant 0 : index
    %c0_119 = arith.constant 0 : index
    %165 = vector.load %arg4[%c0_117, %c0_118, %c0_119] : memref<5x32x24xf32, #tpu.memory_space<vmem>>, vector<1x32x24xf32>
    %166 = vector.shape_cast %165 : vector<1x32x24xf32> to vector<32x24xf32>
    %cst_120 = arith.constant dense<0.000000e+00> : vector<16x24xf32>
    %167 = tpu.matmul %164, %166, %cst_120 {dimension_numbers = #tpu.dot_dimension_numbers<[1], [0], [0], [1], [0, 0, 1, 1], [], []>} : vector<16x32xf32>, vector<32x24xf32>, vector<16x24xf32> -> vector<16x24xf32>
    %168 = arith.addf %163, %167 : vector<16x24xf32>
    %169 = vector.extract_strided_slice %162 {offsets = [16, 0], sizes = [16, 32], strides = [1, 1]} : vector<80x32xf32> to vector<16x32xf32>
    %c1_121 = arith.constant 1 : index
    %c0_122 = arith.constant 0 : index
    %c0_123 = arith.constant 0 : index
    %170 = vector.load %arg4[%c1_121, %c0_122, %c0_123] : memref<5x32x24xf32, #tpu.memory_space<vmem>>, vector<1x32x24xf32>
    %171 = vector.shape_cast %170 : vector<1x32x24xf32> to vector<32x24xf32>
    %cst_124 = arith.constant dense<0.000000e+00> : vector<16x24xf32>
    %172 = tpu.matmul %169, %171, %cst_124 {dimension_numbers = #tpu.dot_dimension_numbers<[1], [0], [0], [1], [0, 0, 1, 1], [], []>} : vector<16x32xf32>, vector<32x24xf32>, vector<16x24xf32> -> vector<16x24xf32>
    %173 = arith.addf %168, %172 : vector<16x24xf32>
    %174 = vector.extract_strided_slice %162 {offsets = [32, 0], sizes = [16, 32], strides = [1, 1]} : vector<80x32xf32> to vector<16x32xf32>
    %c2_125 = arith.constant 2 : index
    %c0_126 = arith.constant 0 : index
    %c0_127 = arith.constant 0 : index
    %175 = vector.load %arg4[%c2_125, %c0_126, %c0_127] : memref<5x32x24xf32, #tpu.memory_space<vmem>>, vector<1x32x24xf32>
    %176 = vector.shape_cast %175 : vector<1x32x24xf32> to vector<32x24xf32>
    %cst_128 = arith.constant dense<0.000000e+00> : vector<16x24xf32>
    %177 = tpu.matmul %174, %176, %cst_128 {dimension_numbers = #tpu.dot_dimension_numbers<[1], [0], [0], [1], [0, 0, 1, 1], [], []>} : vector<16x32xf32>, vector<32x24xf32>, vector<16x24xf32> -> vector<16x24xf32>
    %178 = arith.addf %173, %177 : vector<16x24xf32>
    %179 = vector.extract_strided_slice %162 {offsets = [48, 0], sizes = [16, 32], strides = [1, 1]} : vector<80x32xf32> to vector<16x32xf32>
    %c3_129 = arith.constant 3 : index
    %c0_130 = arith.constant 0 : index
    %c0_131 = arith.constant 0 : index
    %180 = vector.load %arg4[%c3_129, %c0_130, %c0_131] : memref<5x32x24xf32, #tpu.memory_space<vmem>>, vector<1x32x24xf32>
    %181 = vector.shape_cast %180 : vector<1x32x24xf32> to vector<32x24xf32>
    %cst_132 = arith.constant dense<0.000000e+00> : vector<16x24xf32>
    %182 = tpu.matmul %179, %181, %cst_132 {dimension_numbers = #tpu.dot_dimension_numbers<[1], [0], [0], [1], [0, 0, 1, 1], [], []>} : vector<16x32xf32>, vector<32x24xf32>, vector<16x24xf32> -> vector<16x24xf32>
    %183 = arith.addf %178, %182 : vector<16x24xf32>
    %184 = vector.extract_strided_slice %162 {offsets = [64, 0], sizes = [16, 32], strides = [1, 1]} : vector<80x32xf32> to vector<16x32xf32>
    %c4_133 = arith.constant 4 : index
    %c0_134 = arith.constant 0 : index
    %c0_135 = arith.constant 0 : index
    %185 = vector.load %arg4[%c4_133, %c0_134, %c0_135] : memref<5x32x24xf32, #tpu.memory_space<vmem>>, vector<1x32x24xf32>
    %186 = vector.shape_cast %185 : vector<1x32x24xf32> to vector<32x24xf32>
    %cst_136 = arith.constant dense<0.000000e+00> : vector<16x24xf32>
    %187 = tpu.matmul %184, %186, %cst_136 {dimension_numbers = #tpu.dot_dimension_numbers<[1], [0], [0], [1], [0, 0, 1, 1], [], []>} : vector<16x32xf32>, vector<32x24xf32>, vector<16x24xf32> -> vector<16x24xf32>
    %188 = arith.addf %183, %187 : vector<16x24xf32>
    %c0_137 = arith.constant 0 : index
    %c0_138 = arith.constant 0 : index
    %189 = vector.load %arg6[%c0_137, %c0_138] : memref<16x24xf32, #tpu.memory_space<vmem>>, vector<16x24xf32>
    %190 = arith.addf %188, %189 : vector<16x24xf32>
    %cst_139 = arith.constant dense<0xFF800000> : vector<24xf32>
    %191 = vector.multi_reduction <maximumf>, %190, %cst_139 [0] : vector<16x24xf32> to vector<24xf32>
    %192 = vector.shape_cast %191 : vector<24xf32> to vector<1x24xf32>
    %c0_140 = arith.constant 0 : index
    %c0_141 = arith.constant 0 : index
    %193 = vector.load %arg5[%c0_140, %c0_141] : memref<1x24xf32, #tpu.memory_space<vmem>>, vector<1x24xf32>
    %194 = arith.addf %192, %193 : vector<1x24xf32>
    %cst_142 = arith.constant 0.000000e+00 : f32
    %195 = vector.broadcast %cst_142 : f32 to vector<1x24xf32>
    %196 = arith.maximumf %194, %195 : vector<1x24xf32>
    %c0_143 = arith.constant 0 : index
    %c0_144 = arith.constant 0 : index
    %197 = vector.load %arg7[%c0_143, %c0_144] : memref<24x128xf32, #tpu.memory_space<vmem>>, vector<24x128xf32>
    %cst_145 = arith.constant dense<0.000000e+00> : vector<1x128xf32>
    %198 = tpu.matmul %196, %197, %cst_145 {dimension_numbers = #tpu.dot_dimension_numbers<[1], [0], [0], [1], [0, 0, 1, 1], [], []>} : vector<1x24xf32>, vector<24x128xf32>, vector<1x128xf32> -> vector<1x128xf32>
    %c0_146 = arith.constant 0 : index
    %c0_147 = arith.constant 0 : index
    %199 = vector.load %arg8[%c0_146, %c0_147] : memref<1x128xf32, #tpu.memory_space<vmem>>, vector<1x128xf32>
    %200 = arith.addf %198, %199 : vector<1x128xf32>
    %201 = tpu.iota {dimensions = array<i32: 1>} : vector<1x128xi32>
    %c4_i32_148 = arith.constant 4 : i32
    %202 = vector.broadcast %c4_i32_148 : i32 to vector<1x128xi32>
    %203 = arith.cmpi slt, %201, %202 : vector<1x128xi32>
    %cst_149 = arith.constant 0xFF800000 : f32
    %204 = vector.broadcast %cst_149 : f32 to vector<1x128xf32>
    %205 = arith.select %203, %200, %204 : vector<1x128xi1>, vector<1x128xf32>
    %cst_150 = arith.constant dense<0xFF800000> : vector<1xf32>
    %206 = vector.multi_reduction <maximumf>, %205, %cst_150 [1] : vector<1x128xf32> to vector<1xf32>
    %207 = vector.shape_cast %206 : vector<1xf32> to vector<1x1xf32>
    %208 = vector.broadcast %207 : vector<1x1xf32> to vector<1x128xf32>
    %209 = arith.subf %205, %208 : vector<1x128xf32>
    %210 = math.exp %209 : vector<1x128xf32>
    %cst_151 = arith.constant dense<0.000000e+00> : vector<1xf32>
    %211 = vector.multi_reduction <add>, %210, %cst_151 [1] : vector<1x128xf32> to vector<1xf32>
    %212 = vector.shape_cast %211 : vector<1xf32> to vector<1x1xf32>
    %213 = math.log %212 : vector<1x1xf32>
    %214 = arith.addf %207, %213 : vector<1x1xf32>
    %215 = vector.broadcast %214 : vector<1x1xf32> to vector<1x128xf32>
    %216 = arith.subf %205, %215 : vector<1x128xf32>
    %217 = vector.shape_cast %216 : vector<1x128xf32> to vector<1x1x128xf32>
    %c0_152 = arith.constant 0 : index
    %c0_153 = arith.constant 0 : index
    %c0_154 = arith.constant 0 : index
    %218 = vector.load %arg9[%c0_152, %c0_153, %c0_154] : memref<1x1x128xf32, #tpu.memory_space<vmem>>, vector<1x1x128xf32>
    tpu.vector_store %arg9[%c0_152, %c0_153, %c0_154], %217 {strides = array<i32>} : memref<1x1x128xf32, #tpu.memory_space<vmem>>, vector<1x1x128xf32>,
    return
  }
  func.func @transform_1(%arg0: i32, %arg1: memref<2x16xi32, #tpu.memory_space<smem>>) -> (i32, i32) {
    %c0_i32 = arith.constant 0 : i32
    %c0_i32_0 = arith.constant 0 : i32
    %c0_i32_1 = arith.constant 0 : i32
    return %c0_i32, %c0_i32_0 : i32, i32
  }
  func.func @transform_2(%arg0: i32, %arg1: memref<2x16xi32, #tpu.memory_space<smem>>) -> (i32, i32, i32) {
    %c0_i32 = arith.constant 0 : i32
    %c0_i32_0 = arith.constant 0 : i32
    %c0_i32_1 = arith.constant 0 : i32
    %c0_i32_2 = arith.constant 0 : i32
    return %c0_i32, %c0_i32_0, %c0_i32_1 : i32, i32, i32
  }
  func.func @transform_3(%arg0: i32, %arg1: memref<2x16xi32, #tpu.memory_space<smem>>) -> (i32, i32) {
    %c0_i32 = arith.constant 0 : i32
    %c0_i32_0 = arith.constant 0 : i32
    %c0_i32_1 = arith.constant 0 : i32
    return %c0_i32, %c0_i32_0 : i32, i32
  }
  func.func @transform_4(%arg0: i32, %arg1: memref<2x16xi32, #tpu.memory_space<smem>>) -> (i32, i32) {
    %c0_i32 = arith.constant 0 : i32
    %c0_i32_0 = arith.constant 0 : i32
    %c0_i32_1 = arith.constant 0 : i32
    return %c0_i32, %c0_i32_0 : i32, i32
  }
  func.func @transform_5(%arg0: i32, %arg1: memref<2x16xi32, #tpu.memory_space<smem>>) -> (i32, i32) {
    %c0_i32 = arith.constant 0 : i32
    %c0_i32_0 = arith.constant 0 : i32
    %c0_i32_1 = arith.constant 0 : i32
    return %c0_i32, %c0_i32_0 : i32, i32
  }
  func.func @transform_6(%arg0: i32, %arg1: memref<2x16xi32, #tpu.memory_space<smem>>) -> (i32, i32) {
    %c0_i32 = arith.constant 0 : i32
    %c0_i32_0 = arith.constant 0 : i32
    %c0_i32_1 = arith.constant 0 : i32
    return %c0_i32, %c0_i32_0 : i32, i32
  }
  func.func @transform_7(%arg0: i32, %arg1: memref<2x16xi32, #tpu.memory_space<smem>>) -> (i32, i32, i32) {
    %c0_i32 = arith.constant 0 : i32
    %c0_i32_0 = arith.constant 0 : i32
    %c0_i32_1 = arith.constant 0 : i32
    return %arg0, %c0_i32, %c0_i32_0 : i32, i32, i32
  }
}

</mosaic_0001>

<bundles_post_ra>
// kernel: tpu_custom_call.1
= control target key start
LH: loop header
LB: loop body
LE: loop exit
PB: predicated region body
PF: predicated region fallthrough
CT: control target
= control target key end

     0   :  { %s1687_s30 = smov [#allocation5]   ;;  %s2022_s0 = inlined_call_operand.vmem [shape: s32[2,16], index: 0, kind: input, shape index: {}]   ;;  %s2023_s1 = inlined_call_operand.vmem [shape: f32[50,32], index: 1, kind: input, shape index: {}]   ;;  %s2024_s2 = inlined_call_operand.vmem [shape: f32[80,16], index: 2, kind: input, shape index: {}]   ;;  %s2025_s3 = inlined_call_operand.vmem [shape: f32[5,32,24], index: 3, kind: input, shape index: {}]   ;;  %s2026_s4 = inlined_call_operand.vmem [shape: f32[1,24], index: 4, kind: input, shape index: {}]   ;;  %s2027_s5 = inlined_call_operand.vmem [shape: f32[16,24], index: 5, kind: input, shape index: {}]   ;;  %s2028_s6 = inlined_call_operand.vmem [shape: f32[24,128], index: 6, kind: input, shape index: {}]   ;;  %s2029_s7 = inlined_call_operand.vmem [shape: f32[1,128], index: 7, kind: input, shape index: {}]   ;;  %s2030_s8 = inlined_call_operand.hbm [shape: f32[2,1,128], index: 8, kind: output, shape index: {}]  }
   0x1   :  { %s14_s29 = sshll.u32 %s2022_s0, 4  ;;  %s15_s29 = int_to_ptr.vmem [resolvable:$true] %s14_s29 }
   0x2   :  { %17 = dma.vmem_to_smem %s15_s29, 32, %s1687_s30, [#allocation4] }
   0x3   :  { %1633 = dma.done.wait [#allocation4], 32 }
   0x4   :  { %1634 = vsyncadd [#allocation4], 4294967264 }
   0x5   :  { %20 = sfence }
   0x6   :  { %21 = vsyncpa [#allocation7], 0 }
   0x7   :  { %23 = vsyncpa [#allocation7 + $0x1], 0  ;;  %s1736_s9 = smov 0   ;;  %s1738_s10 = smov 0  }
   0x8   :  { %s1740_s11 = smov 0   ;;  %s1742_s12 = smov 0  }
   0x9 LB: > { %s1757_s0 = sadd.s32 4294967295, %s1685_s12   ;;  %s1470_s13 = sadd.s32 4294967294, %s1685_s12   ;;  %s1685_s12 = sphi %s1742_s12, %s2040_s12   ;;  %s1681_s11 = sphi %s1740_s11, %s2039_s11   ;;  %s1677_s10 = sphi %s1738_s10, %s2038_s10   ;;  %s1673_s9 = sphi %s1736_s9, %s2037_s9  }
   0xa   : > { %s1761_s14 = sadd.s32 1, %s1685_s12   ;;  %s162_s15 = sadd.s32 1, %s1681_s11 }
   0xb   : > { %s159_s16 = ssub.s32 %s1685_s12, %s1761_s14  ;;  %p172_p0 = scmp.ne.s32.totalorder %s1681_s11, %s1677_s10 }
   0xc   : > { %p160_p1 = scmp.eq.s32.totalorder %s159_s16, 0  ;;  %p173_p2 = scmp.eq.s32.totalorder %s1757_s0, 1 }
   0xd   : > { %p178_p3 = scmp.ne.s32.totalorder %s1677_s10, %s1673_s9  ;;  %p179_p4 = scmp.eq.s32.totalorder %s1470_s13, 1 }
   0xe   : > { %s1772_s17 = scalar_select %p160_p1, %s1681_s11, %s162_s15  }
   0xf   : > { %p1774_p5 = por %p173_p2, %p172_p0  ;;  %p1778_p6 = por %p179_p4, %p178_p3 }
  0x10   : > { %2032 = sst [smem:[#allocation42_spill]] %s1772_s17  ;;  %p1472_p7 = scmp.ge.s32.totalorder %s1685_s12, 1 }
  0x11   : > { %p215_p8 = scmp.lt.s32.totalorder %s1685_s12, 3 }
  0x13   : > { %p216_p9 = pnand %p1472_p7, %p215_p8 }
  0x14   : > { %s2031_s20 = sand.u32 (!%p216_p9), 1, %s1677_s10   ;;  %s1786_s21 = sshll.u32 (!%p216_p9), %s1757_s0, 7 }
  0x15   : > { %219 = sbr.rel (%p216_p9) target bundleno = 937 (0x3a9), region = 44  ;;  %s240_s22 = sld [smem:[#allocation5 + %s1786_s21]] (!%p216_p9) }
  0x16   : > { %s1794_s26 = scalar_lea.vmem (!%p216_p9), [#allocation6], %s2031_s20 }
  0x1b   : > { %s241_s25 = scalar_lea.vmem %s2023_s1, %s240_s22 }
  0x1c   : > { %v256_v0 = vld [vmem:[%s241_s25] sm:$0x1] }
  0x1d   : > { %257 = vst [vmem:[#allocation2] sm:$0x1] %v256_v0 }
  0x1e   : > { %275 = vsyncadd [#allocation3], 16  ;;  %s276_s27 = sadd.s32 1, %s1786_s21 }
  0x1f   : > { %s277_s28 = sld [smem:[#allocation5 + %s276_s27]] }
  0x25   : > { %s278_s13 = scalar_lea.vmem %s2023_s1, %s277_s28 }
  0x26   : > { %v295_v1 = vld [vmem:[%s278_s13] sm:$0x1] }
  0x27   : > { %296 = vst [vmem:[#allocation2 + $0x1] sm:$0x1] %v295_v1 }
  0x28   : > { %314 = vsyncadd [#allocation3 + $0x1], 16  ;;  %s315_s15 = sadd.s32 2, %s1786_s21 }
  0x29   : > { %s316_s16 = sld [smem:[#allocation5 + %s315_s15]] }
  0x2f   : > { %s317_s24 = scalar_lea.vmem %s2023_s1, %s316_s16 }
  0x30   : > { %v334_v2 = vld [vmem:[%s317_s24] sm:$0x1] }
  0x31   : > { %335 = vst [vmem:[#allocation2 + $0x2] sm:$0x1] %v334_v2 }
  0x32   : > { %353 = vsyncadd [#allocation3 + $0x2], 16  ;;  %s354_s25 = sadd.s32 3, %s1786_s21 }
  0x33   : > { %s355_s27 = sld [smem:[#allocation5 + %s354_s25]] }
  0x39   : > { %s356_s28 = scalar_lea.vmem %s2023_s1, %s355_s27 }
  0x3a   : > { %v373_v3 = vld [vmem:[%s356_s28] sm:$0x1] }
  0x3b   : > { %374 = vst [vmem:[#allocation2 + $0x3] sm:$0x1] %v373_v3 }
  0x3c   : > { %392 = vsyncadd [#allocation3 + $0x3], 16  ;;  %s393_s29 = sadd.s32 4, %s1786_s21 }
  0x3d   : > { %s394_s30 = sld [smem:[#allocation5 + %s393_s29]] }
  0x43   : > { %s395_s16 = scalar_lea.vmem %s2023_s1, %s394_s30 }
  0x44   : > { %v412_v4 = vld [vmem:[%s395_s16] sm:$0x1] }
  0x45   : > { %413 = vst [vmem:[#allocation2 + $0x4] sm:$0x1] %v412_v4 }
  0x46   : > { %431 = vsyncadd [#allocation3 + $0x4], 16  ;;  %s432_s22 = sadd.s32 5, %s1786_s21 }
  0x47   : > { %s433_s23 = sld [smem:[#allocation5 + %s432_s22]] }
  0x4d   : > { %s434_s17 = scalar_lea.vmem %s2023_s1, %s433_s23 }
  0x4e   : > { %v451_v5 = vld [vmem:[%s434_s17] sm:$0x1] }
  0x4f   : > { %452 = vst [vmem:[#allocation2 + $0x5] sm:$0x1] %v451_v5 }
  0x50   : > { %470 = vsyncadd [#allocation3 + $0x5], 16  ;;  %s471_s20 = sadd.s32 6, %s1786_s21 }
  0x51   : > { %s472_s27 = sld [smem:[#allocation5 + %s471_s20]] }
  0x57   : > { %s473_s30 = scalar_lea.vmem %s2023_s1, %s472_s27 }
  0x58   : > { %v490_v6 = vld [vmem:[%s473_s30] sm:$0x1] }
  0x59   : > { %491 = vst [vmem:[#allocation2 + $0x6] sm:$0x1] %v490_v6 }
  0x5a   : > { %509 = vsyncadd [#allocation3 + $0x6], 16  ;;  %s510_s13 = sadd.s32 7, %s1786_s21 }
  0x5b   : > { %s511_s15 = sld [smem:[#allocation5 + %s510_s13]] }
  0x61   : > { %s512_s23 = scalar_lea.vmem %s2023_s1, %s511_s15 }
  0x62   : > { %v529_v7 = vld [vmem:[%s512_s23] sm:$0x1] }
  0x63   : > { %530 = vst [vmem:[#allocation2 + $0x7] sm:$0x1] %v529_v7 }
  0x64   : > { %548 = vsyncadd [#allocation3 + $0x7], 16  ;;  %s549_s24 = sadd.s32 8, %s1786_s21 }
  0x65   : > { %s550_s25 = sld [smem:[#allocation5 + %s549_s24]] }
  0x6b   : > { %s551_s27 = scalar_lea.vmem %s2023_s1, %s550_s25 }
  0x6c   : > { %v568_v8 = vld [vmem:[%s551_s27] sm:$0x1] }
  0x6d   : > { %569 = vst [vmem:[#allocation2 + $0x8] sm:$0x1] %v568_v8 }
  0x6e   : > { %587 = vsyncadd [#allocation3 + $0x8], 16  ;;  %s588_s28 = sadd.s32 9, %s1786_s21 }
  0x6f   : > { %s589_s29 = sld [smem:[#allocation5 + %s588_s28]] }
  0x75   : > { %s590_s15 = scalar_lea.vmem %s2023_s1, %s589_s29 }
  0x76   : > { %v607_v9 = vld [vmem:[%s590_s15] sm:$0x1] }
  0x77   : > { %608 = vst [vmem:[#allocation2 + $0x9] sm:$0x1] %v607_v9 }
  0x78   : > { %626 = vsyncadd [#allocation3 + $0x9], 16  ;;  %s627_s16 = sadd.s32 10, %s1786_s21 }
  0x79   : > { %s628_s22 = sld [smem:[#allocation5 + %s627_s16]] }
  0x7f   : > { %s629_s25 = scalar_lea.vmem %s2023_s1, %s628_s22 }
  0x80   : > { %v646_v10 = vld [vmem:[%s629_s25] sm:$0x1] }
  0x81   : > { %647 = vst [vmem:[#allocation2 + $0xa] sm:$0x1] %v646_v10 }
  0x82   : > { %665 = vsyncadd [#allocation3 + $0xa], 16  ;;  %s666_s17 = sadd.s32 11, %s1786_s21 }
  0x83   : > { %s667_s20 = sld [smem:[#allocation5 + %s666_s17]] }
  0x89   : > { %s668_s29 = scalar_lea.vmem %s2023_s1, %s667_s20 }
  0x8a   : > { %v685_v11 = vld [vmem:[%s668_s29] sm:$0x1] }
  0x8b   : > { %686 = vst [vmem:[#allocation2 + $0xb] sm:$0x1] %v685_v11 }
  0x8c   : > { %704 = vsyncadd [#allocation3 + $0xb], 16  ;;  %s705_s30 = sadd.s32 12, %s1786_s21 }
  0x8d   : > { %s706_s13 = sld [smem:[#allocation5 + %s705_s30]] }
  0x93   : > { %s707_s22 = scalar_lea.vmem %s2023_s1, %s706_s13 }
  0x94   : > { %v724_v12 = vld [vmem:[%s707_s22] sm:$0x1] }
  0x95   : > { %725 = vst [vmem:[#allocation2 + $0xc] sm:$0x1] %v724_v12 }
  0x96   : > { %743 = vsyncadd [#allocation3 + $0xc], 16  ;;  %s744_s23 = sadd.s32 13, %s1786_s21 }
  0x97   : > { %s745_s24 = sld [smem:[#allocation5 + %s744_s23]] }
  0x9d   : > { %s746_s20 = scalar_lea.vmem %s2023_s1, %s745_s24 }
  0x9e   : > { %v763_v13 = vld [vmem:[%s746_s20] sm:$0x1] }
  0x9f   : > { %764 = vst [vmem:[#allocation2 + $0xd] sm:$0x1] %v763_v13 }
  0xa0   : > { %782 = vsyncadd [#allocation3 + $0xd], 16  ;;  %s783_s27 = sadd.s32 14, %s1786_s21 }
  0xa1   : > { %s784_s28 = sld [smem:[#allocation5 + %s783_s27]] }
  0xa7   : > { %s785_s13 = scalar_lea.vmem %s2023_s1, %s784_s28 }
  0xa8   : > { %v802_v14 = vld [vmem:[%s785_s13] sm:$0x1] }
  0xa9   : > { %803 = vst [vmem:[#allocation2 + $0xe] sm:$0x1] %v802_v14 }
  0xaa   : > { %821 = vsyncadd [#allocation3 + $0xe], 16  ;;  %s822_s15 = sadd.s32 15, %s1786_s21 }
  0xab   : > { %s823_s16 = sld [smem:[#allocation5 + %s822_s15]] }
  0xb1   : > { %s824_s24 = scalar_lea.vmem %s2023_s1, %s823_s16 }
  0xb2   : > { %v841_v15 = vld [vmem:[%s824_s24] sm:$0x1] }
  0xb3   : > { %842 = vst [vmem:[#allocation2 + $0xf] sm:$0x1] %v841_v15 }
  0xb4   : > { %860 = vsyncadd [#allocation3 + $0xf], 16 }
  0xb5   : > { %1635 = dma.done.wait [#allocation3], 16 }
  0xb6   : > { %1636 = vsyncadd [#allocation3], 4294967280 }
  0xb7   : > { %1637 = dma.done.wait [#allocation3 + $0x1], 16 }
  0xb8   : > { %1638 = vsyncadd [#allocation3 + $0x1], 4294967280 }
  0xb9   : > { %1639 = dma.done.wait [#allocation3 + $0x2], 16 }
  0xba   : > { %1640 = vsyncadd [#allocation3 + $0x2], 4294967280 }
  0xbb   : > { %1641 = dma.done.wait [#allocation3 + $0x3], 16 }
  0xbc   : > { %1642 = vsyncadd [#allocation3 + $0x3], 4294967280 }
  0xbd   : > { %1643 = dma.done.wait [#allocation3 + $0x4], 16 }
  0xbe   : > { %1644 = vsyncadd [#allocation3 + $0x4], 4294967280 }
  0xbf   : > { %1645 = dma.done.wait [#allocation3 + $0x5], 16 }
  0xc0   : > { %1646 = vsyncadd [#allocation3 + $0x5], 4294967280 }
  0xc1   : > { %1647 = dma.done.wait [#allocation3 + $0x6], 16 }
  0xc2   : > { %1648 = vsyncadd [#allocation3 + $0x6], 4294967280 }
  0xc3   : > { %1649 = dma.done.wait [#allocation3 + $0x7], 16 }
  0xc4   : > { %1650 = vsyncadd [#allocation3 + $0x7], 4294967280 }
  0xc5   : > { %1651 = dma.done.wait [#allocation3 + $0x8], 16 }
  0xc6   : > { %1652 = vsyncadd [#allocation3 + $0x8], 4294967280 }
  0xc7   : > { %1653 = dma.done.wait [#allocation3 + $0x9], 16 }
  0xc8   : > { %1654 = vsyncadd [#allocation3 + $0x9], 4294967280 }
  0xc9   : > { %1655 = dma.done.wait [#allocation3 + $0xa], 16 }
  0xca   : > { %1656 = vsyncadd [#allocation3 + $0xa], 4294967280 }
  0xcb   : > { %1657 = dma.done.wait [#allocation3 + $0xb], 16 }
  0xcc   : > { %1658 = vsyncadd [#allocation3 + $0xb], 4294967280 }
  0xcd   : > { %1659 = dma.done.wait [#allocation3 + $0xc], 16 }
  0xce   : > { %1660 = vsyncadd [#allocation3 + $0xc], 4294967280 }
  0xcf   : > { %1661 = dma.done.wait [#allocation3 + $0xd], 16 }
  0xd0   : > { %1662 = vsyncadd [#allocation3 + $0xd], 4294967280 }
  0xd1   : > { %1663 = dma.done.wait [#allocation3 + $0xe], 16 }
  0xd2   : > { %1664 = vsyncadd [#allocation3 + $0xe], 4294967280 }
  0xd3   : > { %1665 = dma.done.wait [#allocation3 + $0xf], 16 }
  0xd4   : > { %1666 = vsyncadd [#allocation3 + $0xf], 4294967280  ;;  %v895_v16 = vld [vmem:[#allocation2 + $0x8] sm:$0xff]  ;;  %v894_v17 = vld [vmem:[#allocation2] sm:$0xff]  ;;  %vm906_vm0 = vcmask 130048   ;;  %vm993_vm1 = vcmask 261120   ;;  %s1232_s29 = scalar_lea.hbm %s2030_s8, %s1757_s0 }
  0xd5   : > { %951 = vmatpush.msra.mxu0 %v895_v16  ;;  %v896_v18 = vld [vmem:[%s2024_s2] sm:$0xff]  ;;  %1530 = vmatpush.msra.mxu3 %v895_v16  ;;  %v903_v19 = vld [vmem:[%s2024_s2 + $0x38] sm:$0xff]  ;;  %v902_v20 = vld [vmem:[%s2024_s2 + $0x30] sm:$0xff]  ;;  %vm1164_vm2 = vcmask 195584   ;;  %vm1208_vm4 = vcmask 1040384   ;;  %s1234_s30 = sshll.u32 %s1794_s26, 4  ;;  %s1235_s30 = int_to_ptr.vmem [resolvable:$true] %s1234_s30 }
  0xd6   : > { %1529 = vmatpush.msra.mxu1 %v895_v16  ;;  %v897_v21 = vld [vmem:[%s2024_s2 + $0x8] sm:$0xff]  ;;  %v904_v22 = vld [vmem:[%s2024_s2 + $0x40] sm:$0xff]  ;;  %v987_v23 = vld [vmem:[%s2025_s3 + $0x18] sm:$0xff]  ;;  %s1236_s13 = sshll.u32 %s1232_s29, 4  ;;  %s2035_s15 = sand.u32 1, %s1677_s10   ;;  %s1237_s13 = int_to_ptr.hbm [resolvable:$true] %s1236_s13 }
  0xd7   : > { %952 = vmatpush.msra.mxu0 %v894_v17  ;;  %1532 = vmatpush.msra.mxu3 %v894_v17  ;;  %v986_v24 = vld [vmem:[%s2025_s3 + $0x10] sm:$0xff]  ;;  %v985_v25 = vld [vmem:[%s2025_s3 + $0x8] sm:$0xff]  ;;  %v899_v28 = vld [vmem:[%s2024_s2 + $0x18] sm:$0xff]  ;;  %s1224_s16 = scalar_lea.sflag [#allocation7], %s2035_s15  ;;  %s1603_s22 = sshra.s32 %s1237_s13, 4  ;;  %s1604_s22 = int_to_ptr.hbm [resolvable:$true] %s1603_s22 }
  0xd8   : > { %1474 = vmatmul.msk.f32.vlgmr.msra.gmra.mxu0 %vm906_vm0, %v896_v18  ;;  %1481 = vmatmul.msk.f32.vlgmr.msra.gmra.mxu3 %vm906_vm0, %v903_v19  ;;  %v898_v26 = vld [vmem:[%s2024_s2 + $0x10] sm:$0xff]  ;;  %v905_v27 = vld [vmem:[%s2024_s2 + $0x48] sm:$0xff]  ;;  %v900_v29 = vld [vmem:[%s2024_s2 + $0x20] sm:$0xff]  ;;  %s1605_s23 = scalar_lea.hbm %s1604_s22, 1  ;;  %s1609_s21 = scalar_lea.hbm %s2030_s8, 2 }
  0xd9   : > { %1531 = vmatpush.msra.mxu1 %v894_v17  ;;  %1041 = vmatpush.msra.mxu2 %v987_v23  ;;  %v901_v30 = vld [vmem:[%s2024_s2 + $0x28] sm:$0xff]  ;;  %v984_v31 = vld [vmem:[%s2025_s3] sm:$0xff]  ;;  %v1495_v32 = vld [vmem:[%s2025_s3 + $0x58] sm:$0xff]  ;;  %p1606_p10 = scmp.ne.s32.totalorder %s1604_s22, %s1605_s23  ;;  %p1610_p13 = scmp.lt.s32.totalorder %s1604_s22, %s2030_s8 }
  0xda   : > { %1480 = vmatmul.msk.f32.vlgmr.msra.gmra.mxu1 %vm906_vm0, %v902_v20  ;;  %v1487_v33 = vld [vmem:[%s2025_s3 + $0x38] sm:$0xff]  ;;  %v1486_v34 = vld [vmem:[%s2025_s3 + $0x30] sm:$0xff]  ;;  %1075 = vmatpush.msrb.mxu3 %v1495_v32  ;;  %v1485_v36 = vld [vmem:[%s2025_s3 + $0x28] sm:$0xff]  ;;  %p1611_p0 = scmp.lt.s32.totalorder %s1609_s21, %s1605_s23 }
  0xdb   : > { %1042 = vmatpush.msra.mxu2 %v986_v24  ;;  %1012 = vmatpush.msrb.mxu1 %v1487_v33  ;;  %v1494_v35 = vld [vmem:[%s2025_s3 + $0x50] sm:$0xff]  ;;  %v1484_v37 = vld [vmem:[%s2025_s3 + $0x20] sm:$0xff]  ;;  %v1493_v38 = vld [vmem:[%s2025_s3 + $0x48] sm:$0xff]  ;;  %p1607_p11 = pnand %p1606_p10, %p1774_p5 }
  0xdc   : > { %1076 = vmatpush.msrb.mxu3 %v1494_v35  ;;  %v1507_v39 = vld [vmem:[%s2025_s3 + $0x98] sm:$0xff]  ;;  %v1506_v41 = vld [vmem:[%s2025_s3 + $0x90] sm:$0xff]  ;;  %v1492_v42 = vld [vmem:[%s2025_s3 + $0x40] sm:$0xff]  ;;  %p1612_p1 = por %p1611_p0, %p1610_p13 }
  0xdd   : > { %1043 = vmatpush.msra.mxu2 %v985_v25  ;;  %1013 = vmatpush.msrb.mxu1 %v1486_v34  ;;  %v1501_v40 = vld [vmem:[%s2025_s3 + $0x78] sm:$0xff]  ;;  %v1500_v43 = vld [vmem:[%s2025_s3 + $0x70] sm:$0xff]  ;;  %v1505_v44 = vld [vmem:[%s2025_s3 + $0x88] sm:$0xff]  ;;  %p1608_p12 = pneg %p1607_p11 }
  0xde   : > { %1077 = vmatpush.msrb.mxu3 %v1493_v38  ;;  %v1499_v45 = vld [vmem:[%s2025_s3 + $0x68] sm:$0xff]  ;;  %v1498_v46 = vld [vmem:[%s2025_s3 + $0x60] sm:$0xff]  ;;  %v1179_v62 = vld [vmem:[%s2028_s6 + $0x10] sm:$0xff] }
  0xdf   : > { %1044 = vmatpush.msra.mxu2 %v984_v31  ;;  %1014 = vmatpush.msrb.mxu1 %v1485_v36  ;;  %v1504_v48 = vld [vmem:[%s2025_s3 + $0x80] sm:$0xff]  ;;  %v1178_v63 = vld [vmem:[%s2028_s6 + $0x8] sm:$0xff]  ;;  %v1204_v31 = vlaneseq  ;;  %p1613_p2 = pnand %p1612_p1, %p1608_p12 }
  0xe0   : > { %1475 = vmatmul.msk.f32.gmra.mxu0 %vm906_vm0, %v897_v21  ;;  %1482 = vmatmul.msk.f32.gmra.mxu3 %vm906_vm0, %v904_v22  ;;  %v1177_v4 = vld [vmem:[%s2028_s6] sm:$0xff]  ;;  %v1161_v15 = vld [vmem:[%s2027_s5 + $0x8] sm:$0xff] }
  0xe1   : > { %1015 = vmatpush.msrb.mxu1 %v1484_v37  ;;  %1147 = vmatpush.msrb.mxu2 %v1507_v39  ;;  %v1160_v12 = vld [vmem:[%s2027_s5] sm:$0xff]  ;;  %v1205_v32 = vand.u32 127, %v1204_v31 }
  0xe2   : > { %1078 = vmatpush.msrb.mxu3 %v1492_v42  ;;  %v1180_v33 = vld [vmem:[%s2029_s7] sm:$0x1] }
  0xe3   : > { %1111 = vmatpush.msra.mxu1 %v1501_v40  ;;  %1148 = vmatpush.msrb.mxu2 %v1506_v41  ;;  %vm1206_vm3 = vcmp.lt.s32.totalorder %v1205_v32, 4 }
  0xe4   : > { %1197 = vmatpush.msra.mxu3 %v1179_v62 }
  0xe5   : > { %1112 = vmatpush.msra.mxu1 %v1500_v43  ;;  %1149 = vmatpush.msrb.mxu2 %v1505_v44 }
  0xe6   : > { %1198 = vmatpush.msra.mxu3 %v1178_v63 }
  0xe7   : > { %1113 = vmatpush.msra.mxu1 %v1499_v45  ;;  %1150 = vmatpush.msrb.mxu2 %v1504_v48 }
  0xe8   : > { %1476 = vmatmul.msk.f32.gmra.mxu0 %vm906_vm0, %v898_v26  ;;  %1483 = vmatmul.msk.f32.gmra.mxu3 %vm906_vm0, %v905_v27  ;;  %v1174_v27 = vld [vmem:[%s2026_s4] sm:$0x1] }
  0xe9   : > { %1114 = vmatpush.msra.mxu1 %v1498_v46  ;;  %1199 = vmatpush.msra.mxu3 %v1177_v4 }
  0xf0   : > { %1477 = vmatmul.msk.f32.gmra.mxu0 %vm906_vm0, %v899_v28 }
  0xf8   : > { %1478 = vmatmul.msk.f32.gmra.mxu0 %vm906_vm0, %v900_v29 }
 0x100   : > { %1479 = vmatmul.msk.f32.gmra.mxu0 %vm906_vm0, %v901_v30 }
 0x155   : > { %v954_v47 = vpop.f32.mrf.mxu0 }
 0x156   : > { %1490 = vmatmul.msk.f32.vlgmr.msra.gmra.mxu2 %vm993_vm1, %v954_v47 }
 0x157   : > { %v972_v55 = vpop.f32.mrf.mxu1 }
 0x15b   : > { %v975_v49 = vpop.f32.mrf.mxu3 }
 0x15d   : > { %v957_v50 = vpop.f32.mrf.mxu0 }
 0x15e   : > { %1491 = vmatmul.msk.f32.gmra.mxu2 %vm993_vm1, %v957_v50 }
 0x163   : > { %v978_v51 = vpop.f32.mrf.mxu3 }
 0x165   : > { %v960_v52 = vpop.f32.mrf.mxu0 }
 0x166   : > { %1488 = vmatmul.msk.f32.vlgmr.msrb.gmra.mxu1 %vm993_vm1, %v960_v52  ;;  %1508 = vmatmul.msk.f32.vlgmr.msrb.gmra.mxu2 %vm993_vm1, %v978_v51 }
 0x16b   : > { %v981_v53 = vpop.f32.mrf.mxu3 }
 0x16d   : > { %v963_v54 = vpop.f32.mrf.mxu0 }
 0x16e   : > { %1489 = vmatmul.msk.f32.gmra.mxu1 %vm993_vm1, %v963_v54  ;;  %1509 = vmatmul.msk.f32.gmra.mxu2 %vm993_vm1, %v981_v53 }
 0x175   : > { %v966_v56 = vpop.f32.mrf.mxu0 }
 0x176   : > { %1496 = vmatmul.msk.f32.vlgmr.msrb.gmra.mxu3 %vm993_vm1, %v966_v56  ;;  %1502 = vmatmul.msk.f32.vlgmr.msra.gmra.mxu1 %vm993_vm1, %v972_v55 }
 0x17d   : > { %v969_v57 = vpop.f32.mrf.mxu0 }
 0x17e   : > { %1497 = vmatmul.msk.f32.gmra.mxu3 %vm993_vm1, %v969_v57  ;;  %1503 = vmatmul.msk.f32.gmra.mxu1 %vm993_vm1, %v975_v49 }
 0x1d9   : > { %v1046_v59 = vpop.f32.mrf.mxu2 }
 0x1e1   : > { %v1049_v61 = vpop.f32.mrf.mxu2 }
 0x1e3   : > { %v1017_v58 = vpop.f32.mrf.mxu1 }
 0x1e4   : > { %v1047_v0 = vadd.f32 %v1046_v59, %v1017_v58 }
 0x1e9   : > { %v1152_v1 = vpop.f32.mrf.mxu2 }
 0x1eb   : > { %v1020_v60 = vpop.f32.mrf.mxu1 }
 0x1ec   : > { %v1050_v7 = vadd.f32 %v1049_v61, %v1020_v60 }
 0x1f1   : > { %v1155_v13 = vpop.f32.mrf.mxu2 }
 0x1f3   : > { %v1116_v2 = vpop.f32.mrf.mxu1 }
 0x1f9   : > { %v1080_v3 = vpop.f32.mrf.mxu3 }
 0x1fa   : > { %v1086_v5 = vadd.f32 %v1080_v3, %v1047_v0 }
 0x1fb   : > { %v1119_v11 = vpop.f32.mrf.mxu1 }
 0x1fc   : > { %v1122_v6 = vadd.f32 %v1116_v2, %v1086_v5 }
 0x1fe   : > { %v1158_v9 = vadd.f32 %v1152_v1, %v1122_v6 }
 0x200   : > { %v1162_v16 = vadd.f32 %v1160_v12, %v1158_v9 }
 0x201   : > { %v1083_v8 = vpop.f32.mrf.mxu3 }
 0x202   : > { %v1087_v10 = vadd.f32 %v1083_v8, %v1050_v7  ;;  %v1165_v19 = vsel %vm1164_vm2, %v1162_v16, -inf }
 0x204   : > { %v1123_v14 = vadd.f32 %v1119_v11, %v1087_v10 }
 0x206   : > { %v1159_v17 = vadd.f32 %v1155_v13, %v1123_v14 }
 0x208   : > { %v1163_v18 = vadd.f32 %v1161_v15, %v1159_v17 }
 0x20a   : > { %v1166_v20 = vsel %vm1164_vm2, %v1163_v18, -inf }
 0x20b   : > { %v1167_v21 = vmax.f32 %v1165_v19, %v1166_v20 }
 0x20d   : > { %v1168_v22 = vrot.slane %v1167_v21, 4 }
 0x20f   : > { %v1169_v23 = vmax.f32 %v1167_v21, %v1168_v22 }
 0x211   : > { %v1170_v24 = vrot.slane %v1169_v23, 2 }
 0x213   : > { %v1171_v25 = vmax.f32 %v1169_v23, %v1170_v24 }
 0x215   : > { %v1172_v26 = vrot.slane %v1171_v25, 1 }
 0x217   : > { %v1173_v28 = vmax.f32 %v1171_v25, %v1172_v26 }
 0x219   : > { %v1175_v29 = vadd.f32 %v1174_v27, %v1173_v28 }
 0x21b   : > { %v1176_v30 = vmax.f32 %v1175_v29, 0.0 }
 0x21d   : > { %1510 = vmatmul.msk.f32.vlgmr.msra.gmra.mxu3 %vm1164_vm2, %v1176_v30 }
 0x2a0   : > { %v1201_v34 = vpop.f32.mrf.mxu3 }
 0x2a1   : > { %v1202_v35 = vadd.f32 %v1201_v34, %v1180_v33 }
 0x2a3   : > { %v1207_v36 = vsel %vm1206_vm3, %v1202_v35, -inf }
 0x2a4   : > { %v1209_v37 = vsel %vm1208_vm4, %v1207_v36, -inf }
 0x2a5   : > { %1210 = vmax.xlane.f32.xlu0 %v1209_v37 }
 0x318   : > { %v1211_v38 = vpop.xlane.xlu0 %1210 }
 0x319   : > { %v1212_v39 = vsub.f32 %v1207_v36, %v1211_v38 }
 0x31b   : > { %v1213_v40 = vmul.f32 1.442695, %v1212_v39 }
 0x31d   : > { %1573 = vpow2.f32 %v1213_v40 }
 0x323   : > { %v1574_v41 = vpop.eup %1573 }
 0x324   : > { %v1215_v42 = vsel %vm1208_vm4, %v1574_v41, 0.0 }
 0x325   : > { %1216 = vadd.xlane.f32.xlu0 %v1215_v42 }
 0x398   : > { %v1217_v43 = vpop.xlane.xlu0 %1216 }
 0x399   : > { %1575 = vlog2.f32 %v1217_v43 }
 0x39f   : > { %v1576_v44 = vpop.eup %1575 }
 0x3a0   : > { %v1219_v45 = vmul.f32 0.6931472, %v1576_v44 }
 0x3a2   : > { %v1220_v46 = vadd.f32 %v1219_v45, %v1211_v38 }
 0x3a4   : > { %v1221_v47 = vsub.f32 %v1207_v36, %v1220_v46 }
 0x3a6   : > { %1222 = vst [vmem:[%s1794_s26] sm:$0x1] %v1221_v47 }
 0x3a7   : > { %1616 = shalt.err (!%p1613_p2)
}
 0x3a8   : > { %1533 = dma.vmem_to_hbm [thread:$0]  (%p1774_p5), %s1235_s30, 16, %s1237_s13, %s1224_s16  }
 0x3a9 PF: > { %p1539_p3 = scmp.ge.s32.totalorder %s1685_s12, 2  ;;  %s1248_s26 = sand.u32 1, %s1673_s9  }
 0x3aa   : > { %s1249_s20 = scalar_lea.sflag [#allocation7], %s1248_s26 }
 0x3ab   : > { %p1536_p4 = pnand %p1539_p3, %p1778_p6 }
 0x3ad   : > { %p1537_p7 = pneg %p1536_p4 }
 0x3af   : > { %1668 = dma.done.wait (%p1537_p7), %s1249_s20, 16  }
 0x3b0   : > { %1670 = vsyncadd (%p1537_p7), %s1249_s20, 4294967280  ;;  %s2036_s27 = sld [smem:[#allocation42_spill]]  ;;  %p26_p8 = scmp.ge.s32.totalorder %s1761_s14, 4  }
 0x3b1   : > { %s2037_s9 = smov %s1677_s10  ;;  %s2038_s10 = smov %s1681_s11 }
 0x3b2   : > { %s2040_s12 = smov %s1761_s14  ;;  %28 = sbr.rel (!%p26_p8) target bundleno = 9 (0x9), region = 685 }
 0x3b6   : > { %s2039_s11 = smov %s2036_s27 }
 0x3b7   :  { %1254 = vsyncpa [#allocation7], 1 }
 0x3b8   :  { %1256 = vsyncpa [#allocation7 + $0x1], 1 }
 0x3b9   :  { %1257 = vsyncmov [#allocation3] }
 0x3bc   :  { %s1258_s12 = vpop.sfrf %1257 }
 0x3bd   :  { %p1513_p5 = scmp.ne.s32.totalorder %s1258_s12, 0 }
 0x3bf   :  { %1262 = shalt.err (%p1513_p5)  }
 0x3c0   :  { %1264 = vsyncmov [#allocation3 + $0x1] }
 0x3c3   :  { %s1265_s18 = vpop.sfrf %1264 }
 0x3c4   :  { %p1514_p6 = scmp.ne.s32.totalorder %s1265_s18, 0 }
 0x3c6   :  { %1269 = shalt.err (%p1514_p6)  }
 0x3c7   :  { %1271 = vsyncmov [#allocation3 + $0x2] }
 0x3ca   :  { %s1272_s19 = vpop.sfrf %1271 }
 0x3cb   :  { %p1515_p9 = scmp.ne.s32.totalorder %s1272_s19, 0 }
 0x3cd   :  { %1276 = shalt.err (%p1515_p9)  }
 0x3ce   :  { %1278 = vsyncmov [#allocation3 + $0x3] }
 0x3d1   :  { %s1279_s28 = vpop.sfrf %1278 }
 0x3d2   :  { %p1516_p10 = scmp.ne.s32.totalorder %s1279_s28, 0 }
 0x3d4   :  { %1283 = shalt.err (%p1516_p10)  }
 0x3d5   :  { %1285 = vsyncmov [#allocation3 + $0x4] }
 0x3d8   :  { %s1286_s14 = vpop.sfrf %1285 }
 0x3d9   :  { %p1517_p11 = scmp.ne.s32.totalorder %s1286_s14, 0 }
 0x3db   :  { %1290 = shalt.err (%p1517_p11)  }
 0x3dc   :  { %1292 = vsyncmov [#allocation3 + $0x5] }
 0x3df   :  { %s1293_s1 = vpop.sfrf %1292 }
 0x3e0   :  { %p1518_p12 = scmp.ne.s32.totalorder %s1293_s1, 0 }
 0x3e2   :  { %1297 = shalt.err (%p1518_p12)  }
 0x3e3   :  { %1299 = vsyncmov [#allocation3 + $0x6] }
 0x3e6   :  { %s1300_s2 = vpop.sfrf %1299 }
 0x3e7   :  { %p1519_p13 = scmp.ne.s32.totalorder %s1300_s2, 0 }
 0x3e9   :  { %1304 = shalt.err (%p1519_p13)  }
 0x3ea   :  { %1306 = vsyncmov [#allocation3 + $0x7] }
 0x3ed   :  { %s1307_s3 = vpop.sfrf %1306 }
 0x3ee   :  { %p1520_p0 = scmp.ne.s32.totalorder %s1307_s3, 0 }
 0x3f0   :  { %1311 = shalt.err (%p1520_p0)  }
 0x3f1   :  { %1313 = vsyncmov [#allocation3 + $0x8] }
 0x3f4   :  { %s1314_s4 = vpop.sfrf %1313 }
 0x3f5   :  { %p1521_p1 = scmp.ne.s32.totalorder %s1314_s4, 0 }
 0x3f7   :  { %1318 = shalt.err (%p1521_p1)  }
 0x3f8   :  { %1320 = vsyncmov [#allocation3 + $0x9] }
 0x3fb   :  { %s1321_s5 = vpop.sfrf %1320 }
 0x3fc   :  { %p1522_p2 = scmp.ne.s32.totalorder %s1321_s5, 0 }
 0x3fe   :  { %1325 = shalt.err (%p1522_p2)  }
 0x3ff   :  { %1327 = vsyncmov [#allocation3 + $0xa] }
 0x402   :  { %s1328_s6 = vpop.sfrf %1327 }
 0x403   :  { %p1523_p3 = scmp.ne.s32.totalorder %s1328_s6, 0 }
 0x405   :  { %1332 = shalt.err (%p1523_p3)  }
 0x406   :  { %1334 = vsyncmov [#allocation3 + $0xb] }
 0x409   :  { %s1335_s7 = vpop.sfrf %1334 }
 0x40a   :  { %p1524_p4 = scmp.ne.s32.totalorder %s1335_s7, 0 }
 0x40c   :  { %1339 = shalt.err (%p1524_p4)  }
 0x40d   :  { %1341 = vsyncmov [#allocation3 + $0xc] }
 0x410   :  { %s1342_s8 = vpop.sfrf %1341 }
 0x411   :  { %p1525_p7 = scmp.ne.s32.totalorder %s1342_s8, 0 }
 0x413   :  { %1346 = shalt.err (%p1525_p7)  }
 0x414   :  { %1348 = vsyncmov [#allocation3 + $0xd] }
 0x417   :  { %s1349_s9 = vpop.sfrf %1348 }
 0x418   :  { %p1526_p8 = scmp.ne.s32.totalorder %s1349_s9, 0 }
 0x41a   :  { %1353 = shalt.err (%p1526_p8)  }
 0x41b   :  { %1355 = vsyncmov [#allocation3 + $0xe] }
 0x41e   :  { %s1356_s10 = vpop.sfrf %1355 }
 0x41f   :  { %p1527_p5 = scmp.ne.s32.totalorder %s1356_s10, 0 }
 0x421   :  { %1360 = shalt.err (%p1527_p5)  }
 0x422   :  { %1362 = vsyncmov [#allocation3 + $0xf] }
 0x425   :  { %s1363_s11 = vpop.sfrf %1362 }
 0x426   :  { %p1528_p6 = scmp.ne.s32.totalorder %s1363_s11, 0 }
 0x428   :  { %1367 = shalt.err (%p1528_p6)  }

</bundles_post_ra>
